<compile_context>
chip_gen: v7x
topology: tpu7x:2x2x1
jax: 0.10.0
libtpu: 0.0.40
codegen_flags: <defaults>
</compile_context>

<pallas_src>
import functools

import jax
import jax.numpy as jnp
from jax import lax
from jax.experimental import pallas as pl
from jax.experimental.pallas import tpu as pltpu


# --------------------------------------------------------------------------
# Fused Pallas kernel: conv3x3+BN+ReLU -> conv3x3+BN+ReLU -> 1x1 heads
# --------------------------------------------------------------------------
def east_fused_kernel(p1t_ref, w1_ref, b1_ref, w2_ref, b2_ref,
                      wh_ref, bh_ref, out_ref, *, W):
    # p1t_ref: (1, 9*Cin, HW) bf16  transposed im2col of the padded input
    # w1_ref : (C1, 9*Cin)    bf16  conv1 weights (BN folded), transposed
    # b1_ref : (C1, 1)        f32
    # w2_ref : (C2, 9*C1)     bf16  conv2 weights (BN folded), transposed
    # b2_ref : (C2, 1)        f32
    # wh_ref : (9, C2)        bf16  [score | geo] 1x1 weights (BN folded)
    # bh_ref : (9, 1)         f32
    # out_ref: (1, 9, HW)     f32   row 0 = f_score, rows 1..8 = f_geo
    HW = p1t_ref.shape[-1]
    C1 = w1_ref.shape[0]

    # ---- det_conv1: one K=9*Cin im2col matmul on the MXU, + bias, + ReLU ---
    f1t = jnp.dot(w1_ref[...], p1t_ref[0],
                  preferred_element_type=jnp.float32)            # (C1, HW)
    f1t = jnp.maximum(f1t + b1_ref[...], 0.0)

    # ---- build conv2's transposed im2col (9*C1, HW) once in VMEM ----------
    # Zero-extend along the lane (pixel) axis so every 3x3 tap becomes a
    # static lane-shift slice; only the dx (left/right image border) taps
    # need an extra column mask.
    PAD = -(-(W + 1) // 128) * 128            # >= W+1, keeps concat lane-aligned
    col = lax.broadcasted_iota(jnp.int32, (1, HW), 1) % W
    mask_l = (col != 0).astype(jnp.float32)         # dx == -1 invalid at w == 0
    mask_r = (col != W - 1).astype(jnp.float32)     # dx == +1 invalid at w == W-1

    zpad = jnp.zeros((C1, PAD), jnp.float32)
    f1e = jnp.concatenate([zpad, f1t, zpad], axis=1)      # (C1, HW + 2*PAD)

    pieces = []
    for dy in (-1, 0, 1):
        for dx in (-1, 0, 1):
            off = dy * W + dx
            piece = f1e[:, PAD + off:PAD + off + HW]      # (C1, HW) lane shift
            if dx == -1:
                piece = piece * mask_l
            elif dx == 1:
                piece = piece * mask_r
            pieces.append(piece.astype(jnp.bfloat16))
    p2t = jnp.concatenate(pieces, axis=0)                 # (9*C1, HW) bf16

    # ---- det_conv2: single K=9*C1 matmul, + bias, + ReLU -------------------
    f2t = jnp.dot(w2_ref[...], p2t,
                  preferred_element_type=jnp.float32)            # (C2, HW)
    f2t = jnp.maximum(f2t + b2_ref[...], 0.0).astype(jnp.bfloat16)

    # ---- score + geo 1x1 heads in one matmul, post-processing in f32 -------
    ht = jnp.dot(wh_ref[...], f2t,
                 preferred_element_type=jnp.float32) + bh_ref[...]   # (9, HW)
    sig = jax.nn.sigmoid(ht)
    row = lax.broadcasted_iota(jnp.int32, (ht.shape[0], 1), 0)
    scale = jnp.where(row == 0, 1.0, 1600.0)     # geo: (sigmoid - 0.5) * 2 * 800
    shift = jnp.where(row == 0, 0.0, -800.0)
    out_ref[0] = sig * scale + shift


# --------------------------------------------------------------------------
# Wrapper: layout plumbing + pallas_call
# --------------------------------------------------------------------------
def east_head_forward(x_nchw, params):
    B, Cin, H, W = x_nchw.shape
    HW = H * W
    x = jnp.transpose(x_nchw, (0, 2, 3, 1))                     # NCHW -> NHWC

    # conv1 transposed im2col built by XLA in the wrapper: (B, 9*Cin, H*W) bf16
    xp = jnp.pad(x, ((0, 0), (1, 1), (1, 1), (0, 0)))
    taps = [xp[:, dy:dy + H, dx:dx + W, :] for dy in range(3) for dx in range(3)]
    p1 = jnp.concatenate(taps, axis=-1)                          # (B,H,W,9*Cin)
    p1t = p1.reshape(B, HW, 9 * Cin).transpose(0, 2, 1).astype(jnp.bfloat16)

    w1, b1 = params["det_conv1"]       # HWIO (3,3,Cin,C1), (1,C1)
    w2, b2 = params["det_conv2"]       # HWIO (3,3,C1,C2), (1,C2)
    ws, bs = params["score_conv"]      # (1,1,C2,1), (1,1)
    wg, bg = params["geo_conv"]        # (1,1,C2,8), (1,8)
    C1, C2 = w1.shape[-1], w2.shape[-1]
    NH = ws.shape[-1] + wg.shape[-1]   # 1 + 8 = 9 output channels

    w1t = w1.reshape(9 * Cin, C1).T.astype(jnp.bfloat16)         # (C1, 9*Cin)
    w2t = w2.reshape(9 * C1, C2).T.astype(jnp.bfloat16)          # (C2, 9*C1)
    wht = jnp.concatenate([ws.reshape(C2, -1), wg.reshape(C2, -1)],
                          axis=1).T.astype(jnp.bfloat16)         # (NH, C2)
    b1t = b1.reshape(C1, 1)
    b2t = b2.reshape(C2, 1)
    bht = jnp.concatenate([bs.reshape(1, -1), bg.reshape(1, -1)],
                          axis=1).reshape(NH, 1)

    # TODO(synk): at production EAST feature-map sizes, add a spatial
    # "parallel" grid axis with a 1-row halo so per-step VMEM stays within
    # v7x's 64 MiB and both v7x TensorCores are fed; at these sizes the whole
    # image trivially fits.
    kernel = functools.partial(east_fused_kernel, W=W)
    out = pl.pallas_call(
        kernel,
        out_shape=jax.ShapeDtypeStruct((B, NH, HW), jnp.float32),
        grid=(B,),
        in_specs=[
            pl.BlockSpec((1, 9 * Cin, HW), lambda bi: (bi, 0, 0)),
            pl.BlockSpec((C1, 9 * Cin), lambda bi: (0, 0)),
            pl.BlockSpec((C1, 1), lambda bi: (0, 0)),
            pl.BlockSpec((C2, 9 * C1), lambda bi: (0, 0)),
            pl.BlockSpec((C2, 1), lambda bi: (0, 0)),
            pl.BlockSpec((NH, C2), lambda bi: (0, 0)),
            pl.BlockSpec((NH, 1), lambda bi: (0, 0)),
        ],
        out_specs=pl.BlockSpec((1, NH, HW), lambda bi: (bi, 0, 0)),
        compiler_params=pltpu.CompilerParams(
            dimension_semantics=("parallel",)),
    )(p1t, w1t, b1t, w2t, b2t, wht, bht)

    out = out.reshape(B, NH, H, W)                               # already NCHW
    return {"f_score": out[:, 0:1], "f_geo": out[:, 1:]}


# --------------------------------------------------------------------------
# Deterministic parameter construction (conv + BN folded, inference mode)
# --------------------------------------------------------------------------
def fold_bn(w, gamma, beta, mean, var, eps=1e-5):
    scale = gamma / jnp.sqrt(var + eps)                  # (Cout,)
    w_f = (w * scale).astype(jnp.float32)                # scale output channels
    b_f = (beta - mean * scale).astype(jnp.float32)
    return w_f, b_f.reshape(1, -1)


def init_conv_bn(key, kh, kw, cin, cout):
    k1, k2, k3, k4, k5 = jax.random.split(key, 5)
    fan_in = float(cin * kh * kw)
    w = jax.random.normal(k1, (kh, kw, cin, cout), jnp.float32) / jnp.sqrt(fan_in)
    gamma = 1.0 + 0.1 * jax.random.normal(k2, (cout,), jnp.float32)
    beta = 0.1 * jax.random.normal(k3, (cout,), jnp.float32)
    mean = 0.1 * jax.random.normal(k4, (cout,), jnp.float32)
    var = jnp.abs(jax.random.normal(k5, (cout,), jnp.float32)) + 0.5
    return fold_bn(w, gamma, beta, mean, var)


# --------------------------------------------------------------------------
# Pure-JAX reference with matching bf16 matmul operands / f32 accumulation
# (so the check verifies the kernel structure, not bf16 quantization noise).
# --------------------------------------------------------------------------
def east_head_ref(x_nchw, params):
    x = jnp.transpose(x_nchw, (0, 2, 3, 1))

    def conv_bn(inp, w, b, relu):
        y = lax.conv_general_dilated(
            inp.astype(jnp.bfloat16), w.astype(jnp.bfloat16),
            window_strides=(1, 1), padding="SAME",
            dimension_numbers=("NHWC", "HWIO", "NHWC"),
            preferred_element_type=jnp.float32)
        y = y + b.reshape(1, 1, 1, -1)
        return jnp.maximum(y, 0.0) if relu else y

    f = conv_bn(x, *params["det_conv1"], relu=True)
    f = conv_bn(f, *params["det_conv2"], relu=True)
    C2 = f.shape[-1]
    f_bf = f.astype(jnp.bfloat16)
    ws, bs = params["score_conv"]
    wg, bg = params["geo_conv"]
    s = jnp.einsum("bhwc,cd->bhwd", f_bf,
                   ws.reshape(C2, -1).astype(jnp.bfloat16),
                   preferred_element_type=jnp.float32) + bs.reshape(1, 1, 1, -1)
    g = jnp.einsum("bhwc,cd->bhwd", f_bf,
                   wg.reshape(C2, -1).astype(jnp.bfloat16),
                   preferred_element_type=jnp.float32) + bg.reshape(1, 1, 1, -1)
    f_score = jnp.transpose(jax.nn.sigmoid(s), (0, 3, 1, 2))
    f_geo = jnp.transpose((jax.nn.sigmoid(g) - 0.5) * 2.0 * 800.0, (0, 3, 1, 2))
    return {"f_score": f_score, "f_geo": f_geo}


# --------------------------------------------------------------------------
if __name__ == "__main__":
    key = jax.random.PRNGKey(0)
    B, Cin, H, W = 2, 8, 16, 16
    # model_name != 'large'  ->  num_outputs = [64, 32, 1, 8]
    num_outputs = [64, 32, 1, 8]

    k_x, k1, k2, k3, k4 = jax.random.split(key, 5)
    x = jax.random.normal(k_x, (B, Cin, H, W), jnp.float32)   # NCHW like PyTorch

    params = {
        "det_conv1": init_conv_bn(k1, 3, 3, Cin, num_outputs[0]),
        "det_conv2": init_conv_bn(k2, 3, 3, num_outputs[0], num_outputs[1]),
        "score_conv": init_conv_bn(k3, 1, 1, num_outputs[1], num_outputs[2]),
        "geo_conv": init_conv_bn(k4, 1, 1, num_outputs[1], num_outputs[3]),
    }

    pred = jax.jit(lambda xx: east_head_forward(xx, params))(x)
    jax.block_until_ready(pred)

    assert pred["f_score"].shape == (B, 1, H, W)
    assert pred["f_geo"].shape == (B, 8, H, W)

    ref = east_head_ref(x, params)
    # Compare the geo head in pre-scale sigmoid space so the *1600 factor does
    # not hide (or artificially amplify) errors.
    sig_geo_pred = pred["f_geo"] / 1600.0 + 0.5
    sig_geo_ref = ref["f_geo"] / 1600.0 + 0.5
    assert jnp.allclose(pred["f_score"], ref["f_score"], atol=5e-3)
    assert jnp.allclose(sig_geo_pred, sig_geo_ref, atol=5e-3)

    print("KERNEL_OK")
</pallas_src>

<mosaic_0001>
module attributes {stable_mosaic.version = 11 : i64} {
  func.func @east_fused_kernel(%arg0: i32, %arg1: memref<1x72x256xbf16, #tpu.memory_space<vmem>>, %arg2: memref<64x72xbf16, #tpu.memory_space<vmem>>, %arg3: memref<64x1xf32, #tpu.memory_space<vmem>>, %arg4: memref<32x576xbf16, #tpu.memory_space<vmem>>, %arg5: memref<32x1xf32, #tpu.memory_space<vmem>>, %arg6: memref<9x32xbf16, #tpu.memory_space<vmem>>, %arg7: memref<9x1xf32, #tpu.memory_space<vmem>>, %arg8: memref<1x9x256xf32, #tpu.memory_space<vmem>>) attributes {dimension_semantics = [#tpu.dimension_semantics<parallel>], iteration_bounds = array<i64: 2>, scalar_prefetch = 0 : i64, scratch_operands = 0 : i64, tpu.core_type = #tpu.core_type<tc>, window_params = [{transform_indices = @transform_0, window_bounds = array<i64: 1, 72, 256>}, {pipeline_mode = #tpu.pipeline_mode<synchronous>, transform_indices = @transform_1, window_bounds = array<i64: 64, 72>}, {pipeline_mode = #tpu.pipeline_mode<synchronous>, transform_indices = @transform_2, window_bounds = array<i64: 64, 1>}, {pipeline_mode = #tpu.pipeline_mode<synchronous>, transform_indices = @transform_3, window_bounds = array<i64: 32, 576>}, {pipeline_mode = #tpu.pipeline_mode<synchronous>, transform_indices = @transform_4, window_bounds = array<i64: 32, 1>}, {pipeline_mode = #tpu.pipeline_mode<synchronous>, transform_indices = @transform_5, window_bounds = array<i64: 9, 32>}, {pipeline_mode = #tpu.pipeline_mode<synchronous>, transform_indices = @transform_6, window_bounds = array<i64: 9, 1>}, {transform_indices = @transform_7, window_bounds = array<i64: 1, 9, 256>}]} {
    %c0 = arith.constant 0 : index
    %c0_0 = arith.constant 0 : index
    %0 = vector.load %arg2[%c0, %c0_0] : memref<64x72xbf16, #tpu.memory_space<vmem>>, vector<64x72xbf16>
    %c0_1 = arith.constant 0 : index
    %c0_2 = arith.constant 0 : index
    %c0_3 = arith.constant 0 : index
    %1 = vector.load %arg1[%c0_1, %c0_2, %c0_3] : memref<1x72x256xbf16, #tpu.memory_space<vmem>>, vector<1x72x256xbf16>
    %2 = vector.shape_cast %1 : vector<1x72x256xbf16> to vector<72x256xbf16>
    %cst = arith.constant dense<0.000000e+00> : vector<64x256xf32>
    %3 = tpu.matmul %0, %2, %cst {dimension_numbers = #tpu.dot_dimension_numbers<[1], [0], [0], [1], [0, 0, 1, 1], [], []>} : vector<64x72xbf16>, vector<72x256xbf16>, vector<64x256xf32> -> vector<64x256xf32>
    %c0_4 = arith.constant 0 : index
    %c0_5 = arith.constant 0 : index
    %4 = vector.load %arg3[%c0_4, %c0_5] : memref<64x1xf32, #tpu.memory_space<vmem>>, vector<64x1xf32>
    %5 = vector.broadcast %4 : vector<64x1xf32> to vector<64x256xf32>
    %6 = arith.addf %3, %5 : vector<64x256xf32>
    %cst_6 = arith.constant 0.000000e+00 : f32
    %7 = vector.broadcast %cst_6 : f32 to vector<64x256xf32>
    %8 = arith.maximumf %6, %7 : vector<64x256xf32>
    %9 = tpu.iota {dimensions = array<i32: 1>} : vector<1x256xi32>
    %c16_i32 = arith.constant 16 : i32
    %c0_i32 = arith.constant 0 : i32
    %10 = arith.cmpi eq, %c16_i32, %c0_i32 : i32
    %c1_i32 = arith.constant 1 : i32
    %11 = arith.select %10, %c1_i32, %c16_i32 : i32
    %12 = vector.broadcast %11 : i32 to vector<1x256xi32>
    %13 = arith.remsi %9, %12 : vector<1x256xi32>
    %c0_i32_7 = arith.constant 0 : i32
    %14 = vector.broadcast %c0_i32_7 : i32 to vector<1x256xi32>
    %15 = arith.cmpi ne, %13, %14 : vector<1x256xi32>
    %c0_i32_8 = arith.constant 0 : i32
    %16 = vector.broadcast %c0_i32_8 : i32 to vector<1x256xi32>
    %17 = arith.cmpi slt, %13, %16 : vector<1x256xi32>
    %c0_i32_9 = arith.constant 0 : i32
    %18 = arith.cmpi slt, %11, %c0_i32_9 : i32
    %19 = vector.broadcast %18 : i1 to vector<1x256xi1>
    %20 = vector.broadcast %19 : vector<1x256xi1> to vector<1x256xi1>
    %21 = arith.xori %17, %20 : vector<1x256xi1>
    %22 = arith.andi %21, %15 : vector<1x256xi1>
    %23 = vector.broadcast %11 : i32 to vector<1x256xi32>
    %24 = arith.addi %13, %23 : vector<1x256xi32>
    %25 = arith.select %22, %24, %13 : vector<1x256xi1>, vector<1x256xi32>
    %c0_i32_10 = arith.constant 0 : i32
    %26 = vector.broadcast %c0_i32_10 : i32 to vector<1x256xi32>
    %27 = arith.cmpi ne, %25, %26 : vector<1x256xi32>
    %28 = arith.extui %27 : vector<1x256xi1> to vector<1x256xi32>
    %29 = arith.sitofp %28 : vector<1x256xi32> to vector<1x256xf32>
    %c15_i32 = arith.constant 15 : i32
    %30 = vector.broadcast %c15_i32 : i32 to vector<1x256xi32>
    %31 = arith.cmpi ne, %25, %30 : vector<1x256xi32>
    %32 = arith.extui %31 : vector<1x256xi1> to vector<1x256xi32>
    %33 = arith.sitofp %32 : vector<1x256xi32> to vector<1x256xf32>
    %cst_11 = arith.constant 0.000000e+00 : f32
    %34 = vector.broadcast %cst_11 : f32 to vector<64x128xf32>
    %35 = tpu.concatenate %34, %8, %34 in 1 : vector<64x128xf32>, vector<64x256xf32>, vector<64x128xf32> -> vector<64x512xf32>
    %36 = vector.extract_strided_slice %35 {offsets = [0, 111], sizes = [64, 256], strides = [1, 1]} : vector<64x512xf32> to vector<64x256xf32>
    %37 = vector.broadcast %29 : vector<1x256xf32> to vector<64x256xf32>
    %38 = arith.mulf %36, %37 : vector<64x256xf32>
    %39 = arith.truncf %38 : vector<64x256xf32> to vector<64x256xbf16>
    %40 = vector.extract_strided_slice %35 {offsets = [0, 112], sizes = [64, 256], strides = [1, 1]} : vector<64x512xf32> to vector<64x256xf32>
    %41 = arith.truncf %40 : vector<64x256xf32> to vector<64x256xbf16>
    %42 = vector.extract_strided_slice %35 {offsets = [0, 113], sizes = [64, 256], strides = [1, 1]} : vector<64x512xf32> to vector<64x256xf32>
    %43 = vector.broadcast %33 : vector<1x256xf32> to vector<64x256xf32>
    %44 = arith.mulf %42, %43 : vector<64x256xf32>
    %45 = arith.truncf %44 : vector<64x256xf32> to vector<64x256xbf16>
    %46 = vector.extract_strided_slice %35 {offsets = [0, 127], sizes = [64, 256], strides = [1, 1]} : vector<64x512xf32> to vector<64x256xf32>
    %47 = vector.broadcast %29 : vector<1x256xf32> to vector<64x256xf32>
    %48 = arith.mulf %46, %47 : vector<64x256xf32>
    %49 = arith.truncf %48 : vector<64x256xf32> to vector<64x256xbf16>
    %50 = vector.extract_strided_slice %35 {offsets = [0, 128], sizes = [64, 256], strides = [1, 1]} : vector<64x512xf32> to vector<64x256xf32>
    %51 = arith.truncf %50 : vector<64x256xf32> to vector<64x256xbf16>
    %52 = vector.extract_strided_slice %35 {offsets = [0, 129], sizes = [64, 256], strides = [1, 1]} : vector<64x512xf32> to vector<64x256xf32>
    %53 = vector.broadcast %33 : vector<1x256xf32> to vector<64x256xf32>
    %54 = arith.mulf %52, %53 : vector<64x256xf32>
    %55 = arith.truncf %54 : vector<64x256xf32> to vector<64x256xbf16>
    %56 = vector.extract_strided_slice %35 {offsets = [0, 143], sizes = [64, 256], strides = [1, 1]} : vector<64x512xf32> to vector<64x256xf32>
    %57 = vector.broadcast %29 : vector<1x256xf32> to vector<64x256xf32>
    %58 = arith.mulf %56, %57 : vector<64x256xf32>
    %59 = arith.truncf %58 : vector<64x256xf32> to vector<64x256xbf16>
    %60 = vector.extract_strided_slice %35 {offsets = [0, 144], sizes = [64, 256], strides = [1, 1]} : vector<64x512xf32> to vector<64x256xf32>
    %61 = arith.truncf %60 : vector<64x256xf32> to vector<64x256xbf16>
    %62 = vector.extract_strided_slice %35 {offsets = [0, 145], sizes = [64, 256], strides = [1, 1]} : vector<64x512xf32> to vector<64x256xf32>
    %63 = vector.broadcast %33 : vector<1x256xf32> to vector<64x256xf32>
    %64 = arith.mulf %62, %63 : vector<64x256xf32>
    %65 = arith.truncf %64 : vector<64x256xf32> to vector<64x256xbf16>
    %66 = tpu.concatenate %39, %41, %45, %49, %51, %55, %59, %61, %65 in 0 : vector<64x256xbf16>, vector<64x256xbf16>, vector<64x256xbf16>, vector<64x256xbf16>, vector<64x256xbf16>, vector<64x256xbf16>, vector<64x256xbf16>, vector<64x256xbf16>, vector<64x256xbf16> -> vector<576x256xbf16>
    %c0_12 = arith.constant 0 : index
    %c0_13 = arith.constant 0 : index
    %67 = vector.load %arg4[%c0_12, %c0_13] : memref<32x576xbf16, #tpu.memory_space<vmem>>, vector<32x576xbf16>
    %cst_14 = arith.constant dense<0.000000e+00> : vector<32x256xf32>
    %68 = tpu.matmul %67, %66, %cst_14 {dimension_numbers = #tpu.dot_dimension_numbers<[1], [0], [0], [1], [0, 0, 1, 1], [], []>} : vector<32x576xbf16>, vector<576x256xbf16>, vector<32x256xf32> -> vector<32x256xf32>
    %c0_15 = arith.constant 0 : index
    %c0_16 = arith.constant 0 : index
    %69 = vector.load %arg5[%c0_15, %c0_16] : memref<32x1xf32, #tpu.memory_space<vmem>>, vector<32x1xf32>
    %70 = vector.broadcast %69 : vector<32x1xf32> to vector<32x256xf32>
    %71 = arith.addf %68, %70 : vector<32x256xf32>
    %cst_17 = arith.constant 0.000000e+00 : f32
    %72 = vector.broadcast %cst_17 : f32 to vector<32x256xf32>
    %73 = arith.maximumf %71, %72 : vector<32x256xf32>
    %74 = arith.truncf %73 : vector<32x256xf32> to vector<32x256xbf16>
    %c0_18 = arith.constant 0 : index
    %c0_19 = arith.constant 0 : index
    %75 = vector.load %arg6[%c0_18, %c0_19] : memref<9x32xbf16, #tpu.memory_space<vmem>>, vector<9x32xbf16>
    %cst_20 = arith.constant dense<0.000000e+00> : vector<9x256xf32>
    %76 = tpu.matmul %75, %74, %cst_20 {dimension_numbers = #tpu.dot_dimension_numbers<[1], [0], [0], [1], [0, 0, 1, 1], [], []>} : vector<9x32xbf16>, vector<32x256xbf16>, vector<9x256xf32> -> vector<9x256xf32>
    %c0_21 = arith.constant 0 : index
    %c0_22 = arith.constant 0 : index
    %77 = vector.load %arg7[%c0_21, %c0_22] : memref<9x1xf32, #tpu.memory_space<vmem>>, vector<9x1xf32>
    %78 = vector.broadcast %77 : vector<9x1xf32> to vector<9x256xf32>
    %79 = arith.addf %76, %78 : vector<9x256xf32>
    %80 = arith.negf %79 : vector<9x256xf32>
    %81 = math.exp %80 : vector<9x256xf32>
    %cst_23 = arith.constant 1.000000e+00 : f32
    %82 = vector.broadcast %cst_23 : f32 to vector<9x256xf32>
    %83 = arith.addf %82, %81 : vector<9x256xf32>
    %84 = arith.divf %82, %83 : vector<9x256xf32>
    %85 = tpu.iota {dimensions = array<i32: 0>} : vector<9x1xi32>
    %c0_i32_24 = arith.constant 0 : i32
    %86 = vector.broadcast %c0_i32_24 : i32 to vector<9x1xi32>
    %87 = arith.cmpi eq, %85, %86 : vector<9x1xi32>
    %cst_25 = arith.constant 1.000000e+00 : f32
    %cst_26 = arith.constant 1.600000e+03 : f32
    %88 = vector.broadcast %cst_25 : f32 to vector<9x1xf32>
    %89 = vector.broadcast %cst_26 : f32 to vector<9x1xf32>
    %90 = arith.select %87, %88, %89 : vector<9x1xi1>, vector<9x1xf32>
    %c0_i32_27 = arith.constant 0 : i32
    %91 = vector.broadcast %c0_i32_27 : i32 to vector<9x1xi32>
    %92 = arith.cmpi eq, %85, %91 : vector<9x1xi32>
    %cst_28 = arith.constant 0.000000e+00 : f32
    %cst_29 = arith.constant -8.000000e+02 : f32
    %93 = vector.broadcast %cst_28 : f32 to vector<9x1xf32>
    %94 = vector.broadcast %cst_29 : f32 to vector<9x1xf32>
    %95 = arith.select %92, %93, %94 : vector<9x1xi1>, vector<9x1xf32>
    %96 = vector.broadcast %90 : vector<9x1xf32> to vector<9x256xf32>
    %97 = arith.mulf %84, %96 : vector<9x256xf32>
    %98 = vector.broadcast %95 : vector<9x1xf32> to vector<9x256xf32>
    %99 = arith.addf %97, %98 : vector<9x256xf32>
    %c0_30 = arith.constant 0 : index
    %c0_31 = arith.constant 0 : index
    %c0_32 = arith.constant 0 : index
    %100 = vector.load %arg8[%c0_30, %c0_31, %c0_32] : memref<1x9x256xf32, #tpu.memory_space<vmem>>, vector<1x9x256xf32>
    %101 = vector.shape_cast %100 : vector<1x9x256xf32> to vector<9x256xf32>
    %102 = vector.shape_cast %99 : vector<9x256xf32> to vector<1x9x256xf32>
    tpu.vector_store %arg8[%c0_30, %c0_31, %c0_32], %102 {strides = array<i32>} : memref<1x9x256xf32, #tpu.memory_space<vmem>>, vector<1x9x256xf32>,
    return
  }
  func.func @transform_0(%arg0: i32) -> (i32, i32, i32) {
    %c0_i32 = arith.constant 0 : i32
    %c0_i32_0 = arith.constant 0 : i32
    %c0_i32_1 = arith.constant 0 : i32
    return %arg0, %c0_i32, %c0_i32_0 : i32, i32, i32
  }
  func.func @transform_1(%arg0: i32) -> (i32, i32) {
    %c0_i32 = arith.constant 0 : i32
    %c0_i32_0 = arith.constant 0 : i32
    %c0_i32_1 = arith.constant 0 : i32
    return %c0_i32, %c0_i32_0 : i32, i32
  }
  func.func @transform_2(%arg0: i32) -> (i32, i32) {
    %c0_i32 = arith.constant 0 : i32
    %c0_i32_0 = arith.constant 0 : i32
    %c0_i32_1 = arith.constant 0 : i32
    return %c0_i32, %c0_i32_0 : i32, i32
  }
  func.func @transform_3(%arg0: i32) -> (i32, i32) {
    %c0_i32 = arith.constant 0 : i32
    %c0_i32_0 = arith.constant 0 : i32
    %c0_i32_1 = arith.constant 0 : i32
    return %c0_i32, %c0_i32_0 : i32, i32
  }
  func.func @transform_4(%arg0: i32) -> (i32, i32) {
    %c0_i32 = arith.constant 0 : i32
    %c0_i32_0 = arith.constant 0 : i32
    %c0_i32_1 = arith.constant 0 : i32
    return %c0_i32, %c0_i32_0 : i32, i32
  }
  func.func @transform_5(%arg0: i32) -> (i32, i32) {
    %c0_i32 = arith.constant 0 : i32
    %c0_i32_0 = arith.constant 0 : i32
    %c0_i32_1 = arith.constant 0 : i32
    return %c0_i32, %c0_i32_0 : i32, i32
  }
  func.func @transform_6(%arg0: i32) -> (i32, i32) {
    %c0_i32 = arith.constant 0 : i32
    %c0_i32_0 = arith.constant 0 : i32
    %c0_i32_1 = arith.constant 0 : i32
    return %c0_i32, %c0_i32_0 : i32, i32
  }
  func.func @transform_7(%arg0: i32) -> (i32, i32, i32) {
    %c0_i32 = arith.constant 0 : i32
    %c0_i32_0 = arith.constant 0 : i32
    %c0_i32_1 = arith.constant 0 : i32
    return %arg0, %c0_i32, %c0_i32_0 : i32, i32, i32
  }
}

</mosaic_0001>

<bundles_post_ra>
// kernel: _lambda_.1
= control target key start
LH: loop header
LB: loop body
LE: loop exit
PB: predicated region body
PF: predicated region fallthrough
CT: control target
= control target key end

     0   :  { %s2087_s24 = smov 0   ;;  %s3517_s0 = inlined_call_operand.vmem [shape: bf16[2,72,256], index: 0, kind: input, shape index: {}]   ;;  %s3518_s1 = inlined_call_operand.vmem [shape: bf16[64,72], index: 1, kind: input, shape index: {}]   ;;  %s3519_s2 = inlined_call_operand.vmem [shape: f32[64,1], index: 2, kind: input, shape index: {}]   ;;  %s3520_s3 = inlined_call_operand.vmem [shape: bf16[32,576], index: 3, kind: input, shape index: {}]   ;;  %s3521_s4 = inlined_call_operand.vmem [shape: f32[32,1], index: 4, kind: input, shape index: {}]   ;;  %s3522_s5 = inlined_call_operand.vmem [shape: bf16[9,32], index: 5, kind: input, shape index: {}]   ;;  %s3523_s6 = inlined_call_operand.vmem [shape: f32[9,1], index: 6, kind: input, shape index: {}]   ;;  %s3524_s7 = inlined_call_operand.vmem [shape: f32[2,9,256], index: 7, kind: output, shape index: {}]  }
   0x1 LB: > { %s1839_s25 = sadd.s32 4294967295, %s2028_s24   ;;  %p1843_p0 = scmp.ge.s32.totalorder %s2028_s24, 1  ;;  %s2028_s24 = sphi %s2087_s24, %s17_s24  }
   0x2   : > { %p237_p1 = scmp.lt.s32.totalorder %s2028_s24, 3 }
   0x4   : > { %p238_p2 = pnand %p1843_p0, %p237_p1 }
   0x6   : > { %241 = sbr.rel (%p238_p2) target bundleno = 1193 (0x4a9), region = 48 }
   0xd   : > { %p269_p3 = scmp.lt.s32.totalorder %s1839_s25, 1  ;;  %v3525_v0 = vlaneseq  ;;  %v3526_v1 = vmov 0   ;;  %v299_v2 = vld [vmem:[%s3519_s2 + $0x10] sm:$0xff]  ;;  %v297_v3 = vld [vmem:[%s3519_s2] sm:$0xff]  ;;  %v300_v5 = vld [vmem:[%s3519_s2 + $0x18] sm:$0xff]  ;;  %v2031_v22 = vmov 0.0  }
   0xe   : > { %462 = vmatprep.mubr.bf16.mxu0 %v3526_v1  ;;  %1942 = vset.pattern.permute.xlu1 %v3526_v1  ;;  %v298_v6 = vld [vmem:[%s3519_s2 + $0x8] sm:$0xff]  ;;  %v301_v15 = vld [vmem:[%s3519_s2 + $0x20] sm:$0xff]  ;;  %v304_v18 = vld [vmem:[%s3519_s2 + $0x38] sm:$0xff]  ;;  %vm423_vm4 = vcmask 1043456   ;;  %s2032_s23 = smov 15   ;;  %s2034_s29 = smov 127  }
   0xf   : > { %s3639_s25 = smov (!%p269_p3, %s1839_s25), 1  ;;  %1941 = vset.pattern.permute.xlu0 %v3526_v1  ;;  %v520_v4 = vand.u32 127, %v3525_v0  ;;  %317 = vperm.xlu1 %1942, %v299_v2   ;;  %v302_v13 = vld [vmem:[%s3519_s2 + $0x28] sm:$0xff]  ;;  %v303_v20 = vld [vmem:[%s3519_s2 + $0x30] sm:$0xff]  ;;  %v1987_v33 = vld [vmem:[%s3518_s1] sm:$0xff]   ;;  %vm410_vm5 = vcmask 588800  }
  0x10   : > { %s1915_s26 = smul.u32 72, %s3639_s25  ;;  %307 = vperm.xlu0 %1941, %v297_v3   ;;  %s2035_s30 = smov 113   ;;  %v1988_v34 = vld [vmem:[%s3518_s1 + $0x8] sm:$0xff]   ;;  %v2038_v35 = vmov 0.0|0.0   ;;  %v1989_v36 = vld [vmem:[%s3518_s1 + $0x10] sm:$0xff]   ;;  %v1990_v37 = vld [vmem:[%s3518_s1 + $0x18] sm:$0xff]  }
  0x11   : > { %v521_v7 = vadd.s32 128, %v520_v4  ;;  %v526_v9 = vand.u32 15, %v520_v4  ;;  %s2036_s8 = smov 111   ;;  %s2037_s9 = smov 17   ;;  %vm715_vm6 = vcmask 121856   ;;  %vm680_vm7 = vcmask 7168  }
  0x12   : > { %s2111_s10 = scalar_lea.vmem %s3517_s0, %s1915_s26  ;;  %s2033_s26 = smov 1   ;;  %vm645_vm8 = vcmask 1039360   ;;  %vm610_vm9 = vcmask 924672   ;;  %vm564_vm10 = vcmask 908288   ;;  %vm750_vm11 = vcmask 138240  }
  0x13   : > { %v1973_v8 = vld [vmem:[%s2111_s10 + $0x4] ss:$8 sps:$4 sm:$0xff]   ;;  %v1975_v10 = vld [vmem:[%s2111_s10] ss:$8 sps:$4 sm:$0xff]   ;;  %v533_v11 = vand.u32 15, %v521_v7  ;;  %322 = vperm.xlu1 %1942, %v300_v5   ;;  %vm546_vm0 = vcmp.ne.s32.totalorder %v526_v9, 0 }
  0x14   : > { %430 = vmatprep.subr.bf16.mxu0 %v1973_v8  ;;  %v1976_v12 = vld [vmem:[%s2111_s10 + $0x14] ss:$8 sps:$4 sm:$0xff]   ;;  %v1978_v14 = vld [vmem:[%s2111_s10 + $0x10] ss:$8 sps:$4 sm:$0xff]   ;;  %312 = vperm.xlu0 %1941, %v298_v6   ;;  %v1979_v16 = vld [vmem:[%s2111_s10 + $0x24] ss:$8 sps:$4 sm:$0xff]  }
  0x15   : > { %431 = vmatpush1.bf16.msra.mxu0 %v1975_v10  ;;  %vm547_vm1 = vcmp.ne.s32.totalorder %v533_v11, 0  ;;  %v1981_v17 = vld [vmem:[%s2111_s10 + $0x20] ss:$8 sps:$4 sm:$0xff]   ;;  %vm552_vm2 = vcmp.ne.s32.totalorder %v526_v9, 15  ;;  %vm553_vm3 = vcmp.ne.s32.totalorder %v533_v11, 15  ;;  %v1866_v23 = vsel %vm546_vm0, 1.0, %v2031_v22 }
  0x16   : > { %432 = vmatprep.subr.bf16.mxu0 %v1976_v12  ;;  %v1982_v19 = vld [vmem:[%s2111_s10 + $0x34] ss:$8 sps:$4 sm:$0xff]   ;;  %v296_v21 = vld [vmem:[%s2111_s10 + $0x40] sm:$0xff]  ;;  %v1867_v24 = vsel %vm547_vm1, 1.0, %v2031_v22  ;;  %v1868_v25 = vsel %vm552_vm2, 1.0, %v2031_v22  ;;  %v1869_v26 = vsel %vm553_vm3, 1.0, %v2031_v22 }
  0x17   : > { %332 = vperm.xlu1 %1942, %v302_v13   ;;  %v1948_v27 = vpack.i.bf16 %v1867_v24, %v1866_v23  ;;  %v1984_v28 = vld [vmem:[%s2111_s10 + $0x30] ss:$8 sps:$4 sm:$0xff]   ;;  %v1943_v29 = vpack.i.bf16 %v1869_v26, %v1868_v25  ;;  %v1860_v30 = vcombine.high %v296_v21, %v296_v21  ;;  %v1859_v31 = vcombine.low %v296_v21, %v296_v21  ;;  %s2039_s12 = smov 95   ;;  %s2040_s17 = smov 112  }
  0x18   : > { %327 = vperm.xlu0 %1941, %v301_v15   ;;  %s2041_s18 = smov 126   ;;  %s2042_s19 = smov 110   ;;  %vm1000_vm12 = vcmask 777216   ;;  %vm844_vm13 = vcmask 1031168   ;;  %vm937_vm14 = vcmask 900096   ;;  %vm973_vm15 = vcmask 785408  }
  0x19   : > { %433 = vmatpush1.bf16.msra.mxu0 %v1978_v14  ;;  %v425_v32 = vsel %vm423_vm4, %v1859_v31, 0  ;;  %s2043_s20 = smov 96   ;;  %s2044_s21 = smov 94   ;;  %vm880_vm0 = vcmask 916480   ;;  %vm1036_vm1 = vcmask 769024   ;;  %vm1495_vm2 = vcmask 523264  }
  0x1a   : > { %434 = vmatprep.subr.bf16.mxu0 %v1979_v16  ;;  %vm1692_vm3 = vcmask 261120   ;;  %s1890_s14 = sshll.u32 %s3639_s25, 5 }
  0x1b   : > { %342 = vperm.xlu1 %1942, %v304_v18  }
  0x1c   : > { %337 = vperm.xlu0 %1941, %v303_v20  }
  0x1d   : > { %435 = vmatpush1.bf16.msra.mxu0 %v1981_v17 }
  0x1e   : > { %436 = vmatprep.subr.bf16.mxu0 %v1982_v19 }
  0x1f   : > { %1949 = vrot.lane.b32.xlu1 %v1948_v27, %s2032_s23 }
  0x20   : > { %1944 = vrot.lane.b32.xlu0 %v1943_v29, %s2033_s26 }
  0x21   : > { %437 = vmatpush1.bf16.msra.mxu0 %v1984_v28 }
  0x22   : > { %1861 = vmatprep.subr.msk.bf16.mxu0 %vm423_vm4, %v1860_v30 }
  0x23   : > { %1959 = vrot.lane.b32.xlu1 %v1948_v27, %s2034_s29 }
  0x24   : > { %1954 = vrot.lane.b32.xlu0 %v1943_v29, %s2035_s30 }
  0x25   : > { %439 = vmatpush1.bf16.msra.mxu0 %v425_v32 }
  0x27   : > { %1969 = vrot.lane.b32.xlu1 %v1948_v27, %s2036_s8 }
  0x28   : > { %1862 = vmatmul.mubr.msk.bf16.vlgmr.msra.gmra.mrb[0].mxu0 %vm410_vm5, %v1987_v33  ;;  %1964 = vrot.lane.b32.xlu0 %v1943_v29, %s2037_s9 }
  0x29   : > { %472 = vmatprep.mubr.bf16.mxu0 %v3526_v1 }
  0x2b   : > { %790 = vrot.lane.b32.xlu1 %v2038_v35, %s2034_s29 }
  0x2c   : > { %986 = vrot.lane.b32.xlu0 %v2038_v35, %s2039_s12 }
  0x30   : > { %1863 = vmatmul.mubr.msk.bf16.gmra.mrb[4].mxu0 %vm410_vm5, %v1988_v34 }
  0x31   : > { %482 = vmatprep.mubr.bf16.mxu0 %v3526_v1 }
  0x38   : > { %1864 = vmatmul.mubr.msk.bf16.gmra.mrb[8].mxu0 %vm410_vm5, %v1989_v36 }
  0x39   : > { %492 = vmatprep.mubr.bf16.mxu0 %v3526_v1 }
  0x40   : > { %1865 = vmatmul.mubr.msk.bf16.gmra.mrb[12].mxu0 %vm410_vm5, %v1990_v37 }
  0x8e   : > { %v2164_v38 = vpop.permute.xlu1 %317 }
  0x8f   : > { %v308_v39 = vpop.permute.xlu0 %307 }
  0x92   : > { %v2166_v40 = vpop.permute.xlu1 %322 }
  0x93   : > { %v2168_v41 = vpop.permute.xlu0 %312 }
  0x96   : > { %v2170_v42 = vpop.permute.xlu1 %332 }
  0x97   : > { %v2172_v43 = vpop.permute.xlu0 %327 }
  0x9a   : > { %v2174_v44 = vpop.permute.xlu1 %342 }
  0x9b   : > { %v2176_v45 = vpop.permute.xlu0 %337 }
  0x9e   : > { %v1950_v46 = vpop.permute.xlu1 %1949 }
  0x9f   : > { %v1945_v47 = vpop.permute.xlu0 %1944  ;;  %v1952_v53 = vunpack.i.h.bf16 %v1950_v46  ;;  %v2184_v8 = vunpack.i.l.bf16 %v1950_v46 }
  0xa0   : > { %v1947_v48 = vunpack.i.h.bf16 %v1945_v47  ;;  %v2186_v9 = vunpack.i.l.bf16 %v1945_v47 }
  0xa1   : > { %v722_v2 = vmul.f32 0.0, %v1952_v53  ;;  %v2197_v17 = vsel %vm715_vm6, %v2184_v8, %v1952_v53 }
  0xa2   : > { %v1960_v49 = vpop.permute.xlu1 %1959  ;;  %v687_v55 = vmul.f32 0.0, %v1947_v48  ;;  %v2200_v18 = vsel %vm680_vm7, %v2186_v9, %v1947_v48 }
  0xa3   : > { %v1961_v50 = vunpack.i.l.bf16 %v1960_v49  ;;  %v1955_v51 = vpop.permute.xlu0 %1954  ;;  %v739_v6 = vpack.c.bf16 %v722_v2, %v722_v2  ;;  %v2188_v10 = vunpack.i.h.bf16 %v1960_v49 }
  0xa4   : > { %v1956_v52 = vunpack.i.l.bf16 %v1955_v51  ;;  %v704_v63 = vpack.c.bf16 %v687_v55, %v687_v55  ;;  %v2190_v11 = vunpack.i.h.bf16 %v1955_v51 }
  0xa5   : > { %v650_v54 = vmul.f32 0.0, %v1961_v50  ;;  %v2204_v21 = vsel %vm645_vm8, %v1961_v50, %v2188_v10 }
  0xa6   : > { %v1970_v56 = vpop.permute.xlu1 %1969  ;;  %v615_v57 = vmul.f32 0.0, %v1956_v52  ;;  %v2207_v22 = vsel %vm610_vm9, %v1956_v52, %v2190_v11 }
  0xa7   : > { %v667_v58 = vpack.c.bf16 %v650_v54, %v650_v54  ;;  %v1971_v59 = vunpack.i.l.bf16 %v1970_v56  ;;  %v1965_v60 = vpop.permute.xlu0 %1964  ;;  %v2192_v12 = vunpack.i.h.bf16 %v1970_v56 }
  0xa8   : > { %v632_v61 = vpack.c.bf16 %v615_v57, %v615_v57  ;;  %v1967_v62 = vunpack.i.h.bf16 %v1965_v60  ;;  %v2194_v13 = vunpack.i.l.bf16 %v1965_v60 }
  0xa9   : > { %862 = vrot.lane.b32.xlu0 %v667_v58, %s2040_s17  ;;  %v569_v3 = vmul.f32 0.0, %v1971_v59  ;;  %v2212_v26 = vsel %vm564_vm10, %v1971_v59, %v2192_v12 }
  0xaa   : > { %826 = vrot.lane.b32.xlu1 %v632_v61, %s2041_s18  ;;  %v757_v4 = vmul.f32 0.0, %v1967_v62  ;;  %v2216_v27 = vsel %vm750_vm11, %v2194_v13, %v1967_v62 }
  0xab   : > { %v586_v5 = vpack.c.bf16 %v569_v3, %v569_v3 }
  0xac   : > { %v774_v7 = vpack.c.bf16 %v757_v4, %v757_v4 }
  0xad   : > { %923 = vrot.lane.b32.xlu0 %v704_v63, %s2042_s19 }
  0xae   : > { %1140 = vrot.lane.b32.xlu1 %v586_v5, %s2037_s9 }
  0xb1   : > { %959 = vrot.lane.b32.xlu0 %v739_v6, %s2043_s20 }
  0xb2   : > { %1022 = vrot.lane.b32.xlu1 %v774_v7, %s2044_s21 }
  0xfb   : > { %v464_v14 = vpop.f32.mrb[0].mxu0 }
  0xfc   : > { %v465_v15 = vadd.f32 %v464_v14, %v308_v39  ;;  %v466_v16 = vpop.f32.mrb[1].mxu0 }
  0xfd   : > { %v467_v19 = vadd.f32 %v466_v16, %v308_v39  ;;  %v468_v20 = vpop.f32.mrb[2].mxu0 }
  0xfe   : > { %v503_v23 = vmax.f32 %v465_v15, 0.0  ;;  %v469_v24 = vadd.f32 %v468_v20, %v2168_v41  ;;  %v470_v25 = vpop.f32.mrb[3].mxu0 }
  0xff   : > { %v504_v28 = vmax.f32 %v467_v19, 0.0  ;;  %v471_v29 = vadd.f32 %v470_v25, %v2168_v41 }
 0x100   : > { %v505_v30 = vmax.f32 %v469_v24, 0.0  ;;  %v2220_v31 = vmul.f32 %v2207_v22, %v503_v23  ;;  %v2223_v32 = vmul.f32 %v2186_v9, %v503_v23  ;;  %v2226_v33 = vmul.f32 %v2194_v13, %v503_v23 }
 0x101   : > { %v506_v34 = vmax.f32 %v471_v29, 0.0  ;;  %v2229_v35 = vmul.f32 %v2184_v8, %v503_v23  ;;  %v2232_v36 = vmul.f32 %v2204_v21, %v503_v23  ;;  %v2235_v37 = vmul.f32 %v2212_v26, %v503_v23 }
 0x102   : > { %v596_v39 = vpack.c.bf16 %v505_v30, %v503_v23  ;;  %v2238_v41 = vmul.f32 %v2207_v22, %v505_v30  ;;  %v2241_v46 = vmul.f32 %v2186_v9, %v505_v30  ;;  %v2244_v47 = vmul.f32 %v2194_v13, %v505_v30 }
 0x103   : > { %v474_v48 = vpop.f32.mrb[4].mxu0  ;;  %v597_v49 = vpack.c.bf16 %v506_v34, %v504_v28  ;;  %v2247_v50 = vmul.f32 %v2184_v8, %v505_v30  ;;  %v2250_v51 = vmul.f32 %v2204_v21, %v505_v30  ;;  %v2253_v52 = vmul.f32 %v2212_v26, %v505_v30 }
 0x104   : > { %v475_v53 = vadd.f32 %v474_v48, %v2164_v38  ;;  %v476_v54 = vpop.f32.mrb[5].mxu0  ;;  %792 = vrot.lane.b32.xlu1 %v596_v39, %s2034_s29  ;;  %889 = vrot.lane.b32.xlu0 %v596_v39, %s2036_s8  ;;  %v633_v55 = vpack.c.bf16 %v2238_v41, %v2220_v31  ;;  %v702_v56 = vpack.c.bf16 %v2241_v46, %v2223_v32 }
 0x105   : > { %v477_v57 = vadd.f32 %v476_v54, %v2164_v38  ;;  %v478_v58 = vpop.f32.mrb[6].mxu0  ;;  %v2275_v38 = vmul.f32 %v2190_v11, %v504_v28  ;;  %v2281_v6 = vmul.f32 %v2190_v11, %v506_v34  ;;  %v2284_v7 = vmul.f32 %v2200_v18, %v504_v28 }
 0x106   : > { %v2269_v62 = vmax.f32 %v475_v53, 0.0  ;;  %v479_v63 = vadd.f32 %v478_v58, %v2166_v40  ;;  %v480_v2 = vpop.f32.mrb[7].mxu0  ;;  %v2291_v15 = vmul.f32 %v2200_v18, %v506_v34  ;;  %v2294_v16 = vmul.f32 %v2216_v27, %v504_v28 }
 0x107   : > { %v2277_v4 = vmax.f32 %v477_v57, 0.0  ;;  %v481_v5 = vadd.f32 %v480_v2, %v2166_v40  ;;  %v2297_v40 = vmul.f32 %v2216_v27, %v506_v34  ;;  %v2304_v23 = vmul.f32 %v2197_v17, %v504_v28 }
 0x108   : > { %v2286_v14 = vmax.f32 %v479_v63, 0.0  ;;  %891 = vrot.lane.b32.xlu1 %v597_v49, %s2036_s8  ;;  %982 = vrot.lane.b32.xlu0 %v596_v39, %s2039_s12  ;;  %v2307_v24 = vmul.f32 %v2197_v17, %v506_v34  ;;  %v2314_v30 = vmul.f32 %v2192_v12, %v504_v28  ;;  %v2317_v31 = vmul.f32 %v2192_v12, %v506_v34 }
 0x109   : > { %v2299_v19 = vmax.f32 %v481_v5, 0.0  ;;  %v2322_v41 = vmul.f32 %v2188_v10, %v504_v28  ;;  %v2325_v46 = vmul.f32 %v2188_v10, %v506_v34  ;;  %v2344_v63 = vmul.f32 %v2200_v18, %v2277_v4 }
 0x10a   : > { %v2338_v28 = vpack.c.bf16 %v2286_v14, %v2269_v62  ;;  %v2352_v5 = vmul.f32 %v2186_v9, %v2269_v62  ;;  %v2364_v57 = vmul.f32 %v2197_v17, %v2277_v4  ;;  %v2405_v58 = vmul.f32 %v2188_v10, %v2277_v4 }
 0x10b   : > { %v484_v32 = vpop.f32.mrb[8].mxu0  ;;  %v2329_v48 = vpack.c.bf16 %v2299_v19, %v2277_v4  ;;  %v2348_v2 = vmul.f32 %v2200_v18, %v2299_v19  ;;  %v2417_v61 = vmul.f32 %v2204_v21, %v2269_v62  ;;  %v3554_v20 = vpack.c.bf16 %v2244_v47, %v2226_v33 }
 0x10c   : > { %v485_v53 = vadd.f32 %v484_v32, %v2172_v43  ;;  %v486_v54 = vpop.f32.mrb[9].mxu0  ;;  %984 = vrot.lane.b32.xlu1 %v597_v49, %s2039_s12  ;;  %794 = vrot.lane.b32.xlu0 %v597_v49, %s2034_s29  ;;  %v2356_v32 = vmul.f32 %v2186_v9, %v2286_v14  ;;  %3549 = vst [vmem:[#allocation2_spill] sm:$0xff] %v2364_v57  ;;  %3553 = vst [vmem:[#allocation6_spill] sm:$0xff] %v2405_v58 }
 0x10d   : > { %v488_v34 = vpop.f32.mrb[10].mxu0  ;;  %v487_v0 = vadd.f32 %v486_v54, %v2172_v43  ;;  %v2375_v54 = vmul.f32 %v2197_v17, %v2299_v19  ;;  %v2401_v43 = vmul.f32 %v2207_v22, %v2286_v14  ;;  %v3555_v3 = vpack.c.bf16 %v2247_v50, %v2229_v35 }
 0x10e   : > { %v490_v49 = vpop.f32.mrb[11].mxu0  ;;  %v489_v1 = vadd.f32 %v488_v34, %v2170_v42  ;;  %v2366_v39 = vmax.f32 %v485_v53, 0.0  ;;  %v2379_v34 = vmul.f32 %v2184_v8, %v2269_v62  ;;  %v2383_v53 = vmul.f32 %v2184_v8, %v2286_v14 }
 0x10f   : > { %v491_v29 = vadd.f32 %v490_v49, %v2170_v42  ;;  %v2387_v42 = vmul.f32 %v2190_v11, %v2277_v4  ;;  %v2397_v49 = vmul.f32 %v2207_v22, %v2269_v62  ;;  %v2441_v33 = vmul.f32 %v2216_v27, %v2277_v4 }
 0x110   : > { %828 = vrot.lane.b32.xlu1 %v633_v55, %s2041_s18  ;;  %919 = vrot.lane.b32.xlu0 %v702_v56, %s2042_s19  ;;  %3550 = vst [vmem:[#allocation3_spill] sm:$0xff] %v2379_v34  ;;  %v2391_v55 = vmul.f32 %v2190_v11, %v2299_v19  ;;  %v2413_v56 = vmul.f32 %v2188_v10, %v2299_v19  ;;  %v512_v47 = vmax.f32 %v487_v0, 0.0  ;;  %v513_v50 = vmax.f32 %v489_v1, 0.0 }
 0x111   : > { %3551 = vst [vmem:[#allocation4_spill] sm:$0xff] %v2387_v42  ;;  %v2419_v60 = vmax.f32 %v491_v29, 0.0  ;;  %v2434_v29 = vmul.f32 %v2204_v21, %v2286_v14  ;;  %v2445_v35 = vmul.f32 %v2216_v27, %v2299_v19  ;;  %v2456_v42 = vmul.f32 %v2194_v13, %v2269_v62 }
 0x112   : > { %3552 = vst [vmem:[#allocation5_spill] sm:$0xff] %v2391_v55  ;;  %v2460_v58 = vmul.f32 %v2194_v13, %v2286_v14  ;;  %v3556_v1 = vpack.c.bf16 %v2250_v51, %v2232_v36  ;;  %v2478_v34 = vmul.f32 %v2192_v12, %v2299_v19  ;;  %v2497_v19 = vpack.c.bf16 %v513_v50, %v2366_v39 }
 0x113   : > { %v494_v25 = vpop.f32.mrb[12].mxu0  ;;  %v3562_v51 = vpack.c.bf16 %v2281_v6, %v2275_v38  ;;  %v2541_v38 = vmul.f32 %v2184_v8, %v513_v50  ;;  %v2545_v6 = vmul.f32 %v2212_v26, %v2366_v39 }
 0x114   : > { %v495_v59 = vadd.f32 %v494_v25, %v2176_v45  ;;  %v496_v57 = vpop.f32.mrb[13].mxu0  ;;  %1018 = vrot.lane.b32.xlu1 %v3554_v20, %s2044_s21  ;;  %955 = vrot.lane.b32.xlu0 %v3555_v3, %s2043_s20  ;;  %3559 = vst [vmem:[#allocation8_spill] sm:$0xff] %v2497_v19  ;;  %v2532_v19 = vmul.f32 %v2194_v13, %v513_v50 }
 0x115   : > { %v497_v25 = vadd.f32 %v496_v57, %v2176_v45  ;;  %v498_v55 = vpop.f32.mrb[14].mxu0  ;;  %3564 = vst [vmem:[#allocation11_spill] sm:$0xff] %v2545_v6  ;;  %v3570_v45 = vpack.c.bf16 %v2307_v24, %v2304_v23  ;;  %v2585_v6 = vmul.f32 %v2188_v10, %v2419_v60  ;;  %v2601_v23 = vmul.f32 %v2216_v27, %v2419_v60 }
 0x116   : > { %v2447_v3 = vmax.f32 %v495_v59, 0.0  ;;  %v500_v20 = vpop.f32.mrb[15].mxu0  ;;  %v499_v57 = vadd.f32 %v498_v55, %v2174_v44  ;;  %v3557_v59 = vpack.c.bf16 %v2253_v52, %v2235_v37  ;;  %v2474_v55 = vmul.f32 %v2192_v12, %v2277_v4 }
 0x117   : > { %v2462_v0 = vmax.f32 %v497_v25, 0.0  ;;  %v2482_v25 = vmul.f32 %v2212_v26, %v2269_v62  ;;  %v501_v36 = vadd.f32 %v500_v20, %v2174_v44  ;;  %v2489_v37 = vmul.f32 %v2212_v26, %v2286_v14 }
 0x118   : > { %864 = vrot.lane.b32.xlu0 %v3556_v1, %s2040_s17  ;;  %1142 = vrot.lane.b32.xlu1 %v3557_v59, %s2037_s9  ;;  %v2492_v52 = vpack.c.bf16 %v2419_v60, %v512_v47  ;;  %v2501_v62 = vmul.f32 %v2204_v21, %v2366_v39  ;;  %v2504_v44 = vmul.f32 %v2204_v21, %v513_v50  ;;  %v2519_v4 = vmax.f32 %v499_v57, 0.0 }
 0x119   : > { %v2510_v20 = vmul.f32 %v2186_v9, %v2366_v39  ;;  %v2513_v1 = vmul.f32 %v2186_v9, %v513_v50  ;;  %v2517_v59 = vmul.f32 %v2194_v13, %v2366_v39  ;;  %v3563_v14 = vpack.c.bf16 %v2291_v15, %v2284_v7 }
 0x11a   : > { %3558 = vst [vmem:[#allocation7_spill] sm:$0xff] %v2492_v52  ;;  %v2536_v57 = vmul.f32 %v2184_v8, %v2366_v39  ;;  %v2548_v7 = vmul.f32 %v2212_v26, %v513_v50  ;;  %v2560_v52 = vmul.f32 %v2200_v18, %v512_v47  ;;  %v2571_v15 = vmul.f32 %v2188_v10, %v512_v47 }
 0x11b   : > { %3560 = vst [vmem:[#allocation9_spill] sm:$0xff] %v2510_v20  ;;  %3561 = vst [vmem:[#allocation10_spill] sm:$0xff] %v2513_v1  ;;  %v2568_v1 = vmul.f32 %v2200_v18, %v2419_v60  ;;  %v2625_v24 = vpack.c.bf16 %v2519_v4, %v2447_v3  ;;  %v2642_v20 = vmul.f32 %v2194_v13, %v2447_v3 }
 0x11c   : > { %830 = vrot.lane.b32.xlu0 %v3562_v51, %s2041_s18  ;;  %921 = vrot.lane.b32.xlu1 %v3563_v14, %s2042_s19  ;;  %3565 = vst [vmem:[#allocation12_spill] sm:$0xff] %v2548_v7  ;;  %v2554_v51 = vmul.f32 %v2207_v22, %v2366_v39  ;;  %v2557_v14 = vmul.f32 %v2207_v22, %v513_v50  ;;  %3566 = vst [vmem:[#allocation13_spill] sm:$0xff] %v2560_v52  ;;  %v518_v39 = vmax.f32 %v501_v36, 0.0 }
 0x11d   : > { %3567 = vst [vmem:[#allocation14_spill] sm:$0xff] %v2568_v1  ;;  %3568 = vst [vmem:[#allocation15_spill] sm:$0xff] %v2571_v15  ;;  %v3569_v50 = vpack.c.bf16 %v2297_v40, %v2294_v16  ;;  %v2588_v7 = vmul.f32 %v2197_v17, %v512_v47  ;;  %v2594_v16 = vmul.f32 %v2197_v17, %v2419_v60 }
 0x11e   : > { %v2597_v40 = vmul.f32 %v2216_v27, %v512_v47  ;;  %v2613_v36 = vmul.f32 %v2192_v12, %v512_v47  ;;  %v2621_v1 = vmul.f32 %v2192_v12, %v2419_v60  ;;  %3571 = vst [vmem:[#allocation16_spill] sm:$0xff] %v2625_v24  ;;  %v3572_v15 = vpack.c.bf16 %v2317_v31, %v2314_v30 }
 0x11f   : > { %v2648_v30 = vmul.f32 %v2194_v13, %v2519_v4  ;;  %v2652_v31 = vmul.f32 %v2186_v9, %v2447_v3  ;;  %v2671_v13 = vmul.f32 %v2184_v8, %v2519_v4  ;;  %v2679_v52 = vmul.f32 %v2197_v17, %v2462_v0 }
 0x120   : > { %1020 = vrot.lane.b32.xlu0 %v3569_v50, %s2044_s21  ;;  %957 = vrot.lane.b32.xlu1 %v3570_v45, %s2043_s20  ;;  %v2606_v45 = vmul.f32 %v2190_v11, %v512_v47  ;;  %v2610_v50 = vmul.f32 %v2190_v11, %v2419_v60  ;;  %v3573_v47 = vpack.c.bf16 %v2325_v46, %v2322_v41 }
 0x121   : > { %v2638_v60 = vpack.c.bf16 %v518_v39, %v2462_v0  ;;  %3574 = vst [vmem:[#allocation17_spill] sm:$0xff] %v2652_v31  ;;  %v2656_v41 = vmul.f32 %v2186_v9, %v2519_v4  ;;  %v2660_v46 = vmul.f32 %v2200_v18, %v2462_v0  ;;  %3577 = vst [vmem:[#allocation20_spill] sm:$0xff] %v2679_v52 }
 0x122   : > { %v2694_v9 = vmul.f32 %v2207_v22, %v2447_v3  ;;  %v2700_v31 = vmul.f32 %v2207_v22, %v2519_v4  ;;  %v2711_v24 = vmul.f32 %v2204_v21, %v2447_v3  ;;  %v2722_v22 = vmul.f32 %v2188_v10, %v518_v39 }
 0x123   : > { %3575 = vst [vmem:[#allocation18_spill] sm:$0xff] %v2656_v41  ;;  %v2704_v41 = vmul.f32 %v2190_v11, %v2462_v0  ;;  %v2755_v52 = vmul.f32 %v2216_v27, %v2462_v0 }
 0x124   : > { %1144 = vrot.lane.b32.xlu0 %v3572_v15, %s2037_s9  ;;  %866 = vrot.lane.b32.xlu1 %v3573_v47, %s2040_s17  ;;  %v2663_v15 = vmul.f32 %v2200_v18, %v518_v39  ;;  %v2667_v47 = vmul.f32 %v2184_v8, %v2447_v3  ;;  %v2682_v18 = vmul.f32 %v2197_v17, %v518_v39 }
 0x125   : > { %3579 = vst [vmem:[#allocation22_spill] sm:$0xff] %v2704_v41  ;;  %v2707_v8 = vmul.f32 %v2190_v11, %v518_v39  ;;  %v2719_v17 = vmul.f32 %v2188_v10, %v2462_v0  ;;  %v2758_v41 = vmul.f32 %v2216_v27, %v518_v39  ;;  %v3581_v27 = vpack.c.bf16 %v2356_v32, %v2352_v5  ;;  %v3587_v11 = vld [vmem:[#allocation4_spill] sm:$0xff]  ;;  %v3590_v5 = vld [vmem:[#allocation6_spill] sm:$0xff] }
 0x126   : > { %3576 = vst [vmem:[#allocation19_spill] sm:$0xff] %v2667_v47  ;;  %3578 = vst [vmem:[#allocation21_spill] sm:$0xff] %v2682_v18  ;;  %v2715_v47 = vmul.f32 %v2204_v21, %v2519_v4  ;;  %v2730_v18 = vmul.f32 %v2212_v26, %v2447_v3  ;;  %v2734_v21 = vmul.f32 %v2212_v26, %v2519_v4 }
 0x127   : > { %v2746_v3 = vmul.f32 %v2192_v12, %v2462_v0  ;;  %v2751_v4 = vmul.f32 %v2192_v12, %v518_v39  ;;  %v3580_v12 = vpack.c.bf16 %v2348_v2, %v2344_v63  ;;  %v3582_v0 = vld [vmem:[#allocation2_spill] sm:$0xff]  ;;  %v3589_v2 = vpack.c.bf16 %v2401_v43, %v2397_v49  ;;  %v3597_v49 = vld [vmem:[#allocation7_spill] sm:$0xff] }
 0x128   : > { %895 = vrot.lane.b32.xlu0 %v2329_v48, %s2036_s8  ;;  %893 = vrot.lane.b32.xlu1 %v2338_v28, %s2036_s8  ;;  %v593_v26 = vpack.c.bf16 %v2734_v21, %v2730_v18  ;;  %v3583_v39 = vpack.c.bf16 %v2375_v54, %v3582_v0  ;;  %v3591_v32 = vpack.c.bf16 %v2413_v56, %v3590_v5 }
 0x129   : > { %v3592_v54 = vpack.c.bf16 %v2434_v29, %v2417_v61  ;;  %v3594_v43 = vpack.c.bf16 %v2460_v58, %v2456_v42  ;;  %v3595_v56 = vpack.c.bf16 %v2478_v34, %v2474_v55  ;;  %v3596_v61 = vpack.c.bf16 %v2489_v37, %v2482_v25  ;;  %v3598_v29 = vld [vmem:[#allocation8_spill] sm:$0xff]  ;;  %v3600_v34 = vld [vmem:[#allocation10_spill] sm:$0xff]  ;;  %v3601_v42 = vld [vmem:[#allocation9_spill] sm:$0xff]  ;;  %v2844_v25 = vpop.permute.xlu1 %790  ;;  %v2846_v37 = vpop.permute.xlu0 %986 }
 0x12a   : > { %v3599_v58 = vpack.c.bf16 %v2504_v44, %v2501_v62  ;;  %v3604_v55 = vpack.c.bf16 %v2541_v38, %v2536_v57  ;;  %v3605_v62 = vld [vmem:[#allocation12_spill] sm:$0xff]  ;;  %v3606_v44 = vld [vmem:[#allocation11_spill] sm:$0xff] }
 0x12b   : > { %v3612_v57 = vld [vmem:[#allocation15_spill] sm:$0xff] }
 0x12c   : > { %798 = vrot.lane.b32.xlu0 %v2329_v48, %s2034_s29  ;;  %796 = vrot.lane.b32.xlu1 %v2338_v28, %s2034_s29  ;;  %v3613_v38 = vpack.c.bf16 %v2585_v6, %v3612_v57  ;;  %v3616_v6 = vpack.c.bf16 %v2610_v50, %v2606_v45  ;;  %v3619_v50 = vpack.c.bf16 %v2648_v30, %v2642_v20 }
 0x12d   : > { %v2866_v0 = vpop.permute.xlu0 %862  ;;  %v3626_v30 = vld [vmem:[#allocation21_spill] sm:$0xff] }
 0x130   : > { %990 = vrot.lane.b32.xlu0 %v2329_v48, %s2039_s12  ;;  %988 = vrot.lane.b32.xlu1 %v2338_v28, %s2039_s12  ;;  %v3584_v48 = vld [vmem:[#allocation3_spill] sm:$0xff]  ;;  %v3586_v28 = vld [vmem:[#allocation5_spill] sm:$0xff] }
 0x131   : > { %v3585_v10 = vpack.c.bf16 %v2383_v53, %v3584_v48  ;;  %v3588_v63 = vpack.c.bf16 %v3586_v28, %v3587_v11  ;;  %v3593_v53 = vpack.c.bf16 %v2445_v35, %v2441_v33  ;;  %v3602_v33 = vpack.c.bf16 %v3600_v34, %v3601_v42  ;;  %v2878_v48 = vpop.permute.xlu0 %923 }
 0x132   : > { %v3603_v35 = vpack.c.bf16 %v2532_v19, %v2517_v59  ;;  %v3607_v11 = vpack.c.bf16 %v3605_v62, %v3606_v44  ;;  %v3609_v19 = vld [vmem:[#allocation14_spill] sm:$0xff]  ;;  %v3610_v59 = vld [vmem:[#allocation13_spill] sm:$0xff]  ;;  %v3617_v28 = vpack.c.bf16 %v2621_v1, %v2613_v36  ;;  %v3632_v34 = vpack.c.bf16 %v2715_v47, %v2711_v24 }
 0x133   : > { %v3634_v24 = vpack.c.bf16 %v2751_v4, %v2746_v3  ;;  %v3635_v47 = vpack.c.bf16 %v2758_v41, %v2755_v52 }
 0x134   : > { %927 = vrot.lane.b32.xlu0 %v3580_v12, %s2042_s19  ;;  %925 = vrot.lane.b32.xlu1 %v3581_v27, %s2042_s19  ;;  %v3611_v12 = vpack.c.bf16 %v3609_v19, %v3610_v59  ;;  %v2864_v27 = vpop.permute.xlu1 %826 }
 0x138   : > { %963 = vrot.lane.b32.xlu0 %v3583_v39, %s2043_s20  ;;  %961 = vrot.lane.b32.xlu1 %v3585_v10, %s2043_s20  ;;  %v3608_v10 = vpack.c.bf16 %v2557_v14, %v2554_v51  ;;  %v3614_v39 = vpack.c.bf16 %v2594_v16, %v2588_v7  ;;  %v3615_v51 = vpack.c.bf16 %v2601_v23, %v2597_v40  ;;  %v2876_v14 = vpop.permute.xlu1 %1140  ;;  %v3618_v7 = vld [vmem:[#allocation16_spill] sm:$0xff]  ;;  %v2894_v40 = vpop.permute.xlu0 %959 }
 0x13c   : > { %834 = vrot.lane.b32.xlu0 %v3588_v63, %s2041_s18  ;;  %832 = vrot.lane.b32.xlu1 %v3589_v2, %s2041_s18  ;;  %v2892_v16 = vpop.permute.xlu1 %1022  ;;  %v3620_v63 = vld [vmem:[#allocation18_spill] sm:$0xff]  ;;  %v3621_v2 = vld [vmem:[#allocation17_spill] sm:$0xff] }
 0x13d   : > { %v3622_v5 = vpack.c.bf16 %v3620_v63, %v3621_v2 }
 0x140   : > { %870 = vrot.lane.b32.xlu0 %v3591_v32, %s2040_s17  ;;  %868 = vrot.lane.b32.xlu1 %v3592_v54, %s2040_s17 }
 0x144   : > { %1026 = vrot.lane.b32.xlu0 %v3593_v53, %s2044_s21  ;;  %1024 = vrot.lane.b32.xlu1 %v3594_v43, %s2044_s21  ;;  %v3623_v53 = vpack.c.bf16 %v2663_v15, %v2660_v46 }
 0x148   : > { %1148 = vrot.lane.b32.xlu0 %v3595_v56, %s2037_s9  ;;  %1146 = vrot.lane.b32.xlu1 %v3596_v61, %s2037_s9  ;;  %v3627_v61 = vld [vmem:[#allocation20_spill] sm:$0xff] }
 0x14c   : > { %899 = vrot.lane.b32.xlu0 %v3597_v49, %s2036_s8  ;;  %897 = vrot.lane.b32.xlu1 %v3598_v29, %s2036_s8 }
 0x150   : > { %802 = vrot.lane.b32.xlu0 %v3597_v49, %s2034_s29  ;;  %800 = vrot.lane.b32.xlu1 %v3598_v29, %s2034_s29 }
 0x154   : > { %994 = vrot.lane.b32.xlu0 %v3597_v49, %s2039_s12  ;;  %992 = vrot.lane.b32.xlu1 %v3598_v29, %s2039_s12  ;;  %v3628_v49 = vpack.c.bf16 %v3626_v30, %v3627_v61  ;;  %v3629_v29 = vpack.c.bf16 %v2700_v31, %v2694_v9  ;;  %v3633_v31 = vpack.c.bf16 %v2722_v22, %v2719_v17 }
 0x158   : > { %872 = vrot.lane.b32.xlu0 %v3599_v58, %s2040_s17  ;;  %929 = vrot.lane.b32.xlu1 %v3602_v33, %s2042_s19 }
 0x15c   : > { %1028 = vrot.lane.b32.xlu0 %v3603_v35, %s2044_s21  ;;  %965 = vrot.lane.b32.xlu1 %v3604_v55, %s2043_s20 }
 0x160   : > { %1150 = vrot.lane.b32.xlu0 %v3607_v11, %s2037_s9  ;;  %836 = vrot.lane.b32.xlu1 %v3608_v10, %s2041_s18 }
 0x164   : > { %931 = vrot.lane.b32.xlu0 %v3611_v12, %s2042_s19  ;;  %874 = vrot.lane.b32.xlu1 %v3613_v38, %s2040_s17 }
 0x168   : > { %967 = vrot.lane.b32.xlu0 %v3614_v39, %s2043_s20  ;;  %1030 = vrot.lane.b32.xlu1 %v3615_v51, %s2044_s21 }
 0x16c   : > { %838 = vrot.lane.b32.xlu0 %v3616_v6, %s2041_s18  ;;  %1152 = vrot.lane.b32.xlu1 %v3617_v28, %s2037_s9 }
 0x170   : > { %901 = vrot.lane.b32.xlu0 %v3618_v7, %s2036_s8  ;;  %804 = vrot.lane.b32.xlu1 %v3618_v7, %s2034_s29 }
 0x174   : > { %806 = vrot.lane.b32.xlu0 %v2638_v60, %s2034_s29  ;;  %996 = vrot.lane.b32.xlu1 %v3618_v7, %s2039_s12 }
 0x176   : > { %v793_v23 = vpop.permute.xlu1 %792  ;;  %v890_v45 = vpop.permute.xlu0 %889 }
 0x177   : > { %v809_v21 = vsel %vm645_vm8, %v2844_v25, %v793_v23 }
 0x178   : > { %998 = vrot.lane.b32.xlu0 %v2638_v60, %s2039_s12  ;;  %903 = vrot.lane.b32.xlu1 %v2638_v60, %s2036_s8  ;;  %v3624_v60 = vld [vmem:[#allocation19_spill] sm:$0xff] }
 0x179   : > { %v3625_v43 = vpack.c.bf16 %v2671_v13, %v3624_v60  ;;  %v3630_v13 = vld [vmem:[#allocation22_spill] sm:$0xff] }
 0x17a   : > { %v892_v1 = vpop.permute.xlu1 %891  ;;  %v983_v36 = vpop.permute.xlu0 %982  ;;  %v3631_v58 = vpack.c.bf16 %v2707_v8, %v3630_v13 }
 0x17b   : > { %v906_v44 = vsel %vm564_vm10, %v890_v45, %v892_v1 }
 0x17c   : > { %1032 = vrot.lane.b32.xlu0 %v3619_v50, %s2044_s21  ;;  %933 = vrot.lane.b32.xlu1 %v3622_v5, %s2042_s19 }
 0x17e   : > { %v985_v32 = vpop.permute.xlu1 %984  ;;  %v795_v54 = vpop.permute.xlu0 %794 }
 0x17f   : > { %v810_v62 = vsel %vm645_vm8, %v793_v23, %v795_v54  ;;  %v1002_v19 = vsel %vm1000_vm12, %v985_v32, %v2846_v37  ;;  %v1001_v38 = vsel %vm1000_vm12, %v983_v36, %v985_v32 }
 0x180   : > { %935 = vrot.lane.b32.xlu0 %v3623_v53, %s2042_s19  ;;  %969 = vrot.lane.b32.xlu1 %v3625_v43, %s2043_s20 }
 0x182   : > { %v2920_v56 = vpop.permute.xlu1 %828  ;;  %v920_v20 = vpop.permute.xlu0 %919 }
 0x183   : > { %v845_v57 = vsel %vm844_vm13, %v2864_v27, %v2920_v56 }
 0x184   : > { %971 = vrot.lane.b32.xlu0 %v3628_v49, %s2043_s20  ;;  %840 = vrot.lane.b32.xlu1 %v3629_v29, %s2041_s18 }
 0x186   : > { %v2930_v46 = vpop.permute.xlu1 %1018  ;;  %v2932_v15 = vpop.permute.xlu0 %955 }
 0x188   : > { %842 = vrot.lane.b32.xlu0 %v3631_v58, %s2041_s18  ;;  %876 = vrot.lane.b32.xlu1 %v3632_v34, %s2040_s17 }
 0x18a   : > { %v2942_v42 = vpop.permute.xlu0 %864  ;;  %v1143_v33 = vpop.permute.xlu1 %1142 }
 0x18b   : > { %v1351_v52 = vsel %vm750_vm11, %v2876_v14, %v1143_v33 }
 0x18c   : > { %878 = vrot.lane.b32.xlu0 %v3633_v31, %s2040_s17  ;;  %1154 = vrot.lane.b32.xlu1 %v593_v26, %s2037_s9  ;;  %s278_s17 = scalar_lea.vmem %s3524_s7, %s1890_s14 }
 0x18e   : > { %v831_v9 = vpop.permute.xlu0 %830  ;;  %v922_v8 = vpop.permute.xlu1 %921 }
 0x18f   : > { %v938_v6 = vsel %vm937_vm14, %v920_v20, %v922_v8  ;;  %v939_v23 = vsel %vm937_vm14, %v922_v8, %v2878_v48  ;;  %v846_v50 = vsel %vm844_vm13, %v2920_v56, %v831_v9 }
 0x190   : > { %1156 = vrot.lane.b32.xlu0 %v3634_v24, %s2037_s9  ;;  %1034 = vrot.lane.b32.xlu1 %v3635_v47, %s2044_s21 }
 0x192   : > { %v2960_v35 = vpop.permute.xlu0 %1020  ;;  %v958_v17 = vpop.permute.xlu1 %957 }
 0x193   : > { %v974_v63 = vsel %vm973_vm15, %v2932_v15, %v958_v17 }
 0x194   : > { %1234 = vrot.lane.b32.xlu0 %v892_v1, %s2037_s9  ;;  %1230 = vrot.lane.b32.xlu1 %v890_v45, %s2037_s9  ;;  %v975_v45 = vsel %vm973_vm15, %v958_v17, %v2894_v40 }
 0x196   : > { %v1145_v18 = vpop.permute.xlu0 %1144  ;;  %v2964_v22 = vpop.permute.xlu1 %866 }
 0x197   : > { %v1352_v3 = vsel %vm750_vm11, %v1143_v33, %v1145_v18  ;;  %v882_v32 = vsel %vm880_vm0, %v2942_v42, %v2964_v22 }
 0x198   : > { %1158 = vrot.lane.b32.xlu0 %v809_v21, %s2037_s9  ;;  %1302 = vrot.lane.b32.xlu1 %v983_v36, %s2037_s9 }
 0x199   : > { %1502 = vmatprep.subr.bf16.mxu0 %v1352_v3 }
 0x19a   : > { %1503 = vmatpush1.bf16.msra.mxu0 %v1351_v52  ;;  %v896_v41 = vpop.permute.xlu0 %895  ;;  %v894_v26 = vpop.permute.xlu1 %893 }
 0x19b   : > { %v907_v30 = vsel %vm564_vm10, %v894_v26, %v896_v41 }
 0x19c   : > { %1254 = vrot.lane.b32.xlu0 %v920_v20, %s2037_s9  ;;  %1162 = vrot.lane.b32.xlu1 %v795_v54, %s2037_s9 }
 0x19e   : > { %v2975_v4 = vpop.permute.xlu0 %798  ;;  %v2977_v55 = vpop.permute.xlu1 %796 }
 0x19f   : > { %v811_v29 = vsel %vm645_vm8, %v2844_v25, %v2977_v55  ;;  %v812_v58 = vsel %vm645_vm8, %v2977_v55, %v2975_v4 }
 0x1a0   : > { %1160 = vrot.lane.b32.xlu0 %v810_v62, %s2037_s9  ;;  %1232 = vrot.lane.b32.xlu1 %v906_v44, %s2037_s9 }
 0x1a2   : > { %v2983_v11 = vpop.permute.xlu0 %990  ;;  %v2985_v10 = vpop.permute.xlu1 %988 }
 0x1a3   : > { %v1004_v31 = vsel %vm1000_vm12, %v2983_v11, %v2846_v37 }
 0x1a4   : > { %1306 = vrot.lane.b32.xlu0 %v1002_v19, %s2037_s9  ;;  %1278 = vrot.lane.b32.xlu1 %v2932_v15, %s2037_s9 }
 0x1a6   : > { %v2992_v59 = vpop.permute.xlu0 %927  ;;  %v2994_v12 = vpop.permute.xlu1 %925 }
 0x1a7   : > { %v940_v21 = vsel %vm937_vm14, %v2994_v12, %v2992_v59  ;;  %v941_v3 = vsel %vm937_vm14, %v2992_v59, %v2878_v48 }
 0x1a8   : > { %1182 = vrot.lane.b32.xlu0 %v845_v57, %s2037_s9  ;;  %1304 = vrot.lane.b32.xlu1 %v1001_v38, %s2037_s9 }
 0x1aa   : > { %v3002_v39 = vpop.permute.xlu0 %963  ;;  %v3004_v51 = vpop.permute.xlu1 %961 }
 0x1ac   : > { %1186 = vrot.lane.b32.xlu1 %v831_v9, %s2037_s9  ;;  %1256 = vrot.lane.b32.xlu0 %v938_v6, %s2037_s9  ;;  %v1003_v9 = vsel %vm1000_vm12, %v2985_v10, %v2983_v11 }
 0x1ae   : > { %v3009_v28 = vpop.permute.xlu0 %834  ;;  %v3011_v7 = vpop.permute.xlu1 %832 }
 0x1af   : > { %v847_v47 = vsel %vm844_vm13, %v2864_v27, %v3011_v7  ;;  %v848_v44 = vsel %vm844_vm13, %v3011_v7, %v3009_v28 }
 0x1b0   : > { %1258 = vrot.lane.b32.xlu1 %v939_v23, %s2037_s9  ;;  %1282 = vrot.lane.b32.xlu0 %v975_v45, %s2037_s9 }
 0x1b2   : > { %v3019_v1 = vpop.permute.xlu0 %870  ;;  %v3021_v36 = vpop.permute.xlu1 %868 }
 0x1b4   : > { %1184 = vrot.lane.b32.xlu0 %v846_v50, %s2037_s9  ;;  %1280 = vrot.lane.b32.xlu1 %v974_v63, %s2037_s9 }
 0x1b6   : > { %v3029_v2 = vpop.permute.xlu0 %1026  ;;  %v3031_v5 = vpop.permute.xlu1 %1024 }
 0x1b8   : > { %1208 = vrot.lane.b32.xlu0 %v882_v32, %s2037_s9  ;;  %1308 = vrot.lane.b32.xlu1 %v2985_v10, %s2037_s9 }
 0x1ba   : > { %v1149_v54 = vpop.permute.xlu0 %1148  ;;  %v1147_v53 = vpop.permute.xlu1 %1146 }
 0x1bb   : > { %v1354_v60 = vsel %vm750_vm11, %v1147_v53, %v1149_v54  ;;  %v1353_v43 = vsel %vm750_vm11, %v2876_v14, %v1147_v53 }
 0x1bc   : > { %1236 = vrot.lane.b32.xlu0 %v894_v26, %s2037_s9  ;;  %1168 = vrot.lane.b32.xlu1 %v2975_v4, %s2037_s9  ;;  %v976_v26 = vsel %vm973_vm15, %v3004_v51, %v3002_v39  ;;  %v977_v4 = vsel %vm973_vm15, %v3002_v39, %v2894_v40 }
 0x1bd   : > { %1504 = vmatprep.subr.bf16.mxu0 %v1354_v60 }
 0x1be   : > { %1505 = vmatpush1.bf16.msra.mxu0 %v1353_v43  ;;  %v900_v56 = vpop.permute.xlu0 %899  ;;  %v898_v20 = vpop.permute.xlu1 %897 }
 0x1bf   : > { %v908_v6 = vsel %vm564_vm10, %v898_v20, %v900_v56 }
 0x1c0   : > { %1240 = vrot.lane.b32.xlu0 %v896_v41, %s2037_s9  ;;  %1238 = vrot.lane.b32.xlu1 %v907_v30, %s2037_s9 }
 0x1c2   : > { %v803_v61 = vpop.permute.xlu0 %802  ;;  %v801_v49 = vpop.permute.xlu1 %800 }
 0x1c3   : > { %v813_v38 = vsel %vm645_vm8, %v2844_v25, %v801_v49  ;;  %v814_v23 = vsel %vm645_vm8, %v801_v49, %v803_v61 }
 0x1c4   : > { %1164 = vrot.lane.b32.xlu0 %v811_v29, %s2037_s9  ;;  %1260 = vrot.lane.b32.xlu1 %v2994_v12, %s2037_s9 }
 0x1c6   : > { %v995_v15 = vpop.permute.xlu0 %994  ;;  %v993_v13 = vpop.permute.xlu1 %992 }
 0x1c7   : > { %v1006_v63 = vsel %vm1000_vm12, %v995_v15, %v2846_v37  ;;  %v1005_v32 = vsel %vm1000_vm12, %v993_v13, %v995_v15 }
 0x1c8   : > { %1166 = vrot.lane.b32.xlu0 %v812_v58, %s2037_s9  ;;  %1284 = vrot.lane.b32.xlu1 %v3004_v51, %s2037_s9 }
 0x1ca   : > { %v3060_v34 = vpop.permute.xlu0 %872  ;;  %v3062_v33 = vpop.permute.xlu1 %929 }
 0x1cc   : > { %1312 = vrot.lane.b32.xlu0 %v1004_v31, %s2037_s9  ;;  %1310 = vrot.lane.b32.xlu1 %v1003_v9, %s2037_s9 }
 0x1ce   : > { %v3072_v8 = vpop.permute.xlu0 %1028  ;;  %v3074_v24 = vpop.permute.xlu1 %965 }
 0x1d0   : > { %1192 = vrot.lane.b32.xlu1 %v3009_v28, %s2037_s9  ;;  %1188 = vrot.lane.b32.xlu0 %v847_v47, %s2037_s9 }
 0x1d2   : > { %v1151_v17 = vpop.permute.xlu0 %1150  ;;  %v3082_v18 = vpop.permute.xlu1 %836 }
 0x1d3   : > { %v1355_v59 = vsel %vm750_vm11, %v2876_v14, %v1151_v17  ;;  %v849_v60 = vsel %vm844_vm13, %v2864_v27, %v3082_v18 }
 0x1d4   : > { %1262 = vrot.lane.b32.xlu1 %v940_v21, %s2037_s9  ;;  %1264 = vrot.lane.b32.xlu0 %v941_v3, %s2037_s9 }
 0x1d6   : > { %v932_v52 = vpop.permute.xlu0 %931  ;;  %v3092_v41 = vpop.permute.xlu1 %874 }
 0x1d7   : > { %v942_v30 = vsel %vm937_vm14, %v3062_v33, %v932_v52 }
 0x1d8   : > { %1286 = vrot.lane.b32.xlu1 %v976_v26, %s2037_s9  ;;  %1288 = vrot.lane.b32.xlu0 %v977_v4, %s2037_s9 }
 0x1da   : > { %v968_v55 = vpop.permute.xlu0 %967  ;;  %v3102_v62 = vpop.permute.xlu1 %1030 }
 0x1db   : > { %v978_v29 = vsel %vm973_vm15, %v3074_v24, %v968_v55  ;;  %v979_v15 = vsel %vm973_vm15, %v968_v55, %v2894_v40 }
 0x1dc   : > { %1190 = vrot.lane.b32.xlu0 %v848_v44, %s2037_s9  ;;  %1242 = vrot.lane.b32.xlu1 %v898_v20, %s2037_s9  ;;  %v943_v20 = vsel %vm937_vm14, %v932_v52, %v2878_v48 }
 0x1de   : > { %v839_v11 = vpop.permute.xlu0 %838  ;;  %v1153_v10 = vpop.permute.xlu1 %1152 }
 0x1df   : > { %v1356_v19 = vsel %vm750_vm11, %v1151_v17, %v1153_v10 }
 0x1e0   : > { %1246 = vrot.lane.b32.xlu0 %v900_v56, %s2037_s9  ;;  %1314 = vrot.lane.b32.xlu1 %v993_v13, %s2037_s9 }
 0x1e1   : > { %1506 = vmatprep.subr.bf16.mxu0 %v1356_v19 }
 0x1e2   : > { %1507 = vmatpush1.bf16.msra.mxu0 %v1355_v59  ;;  %v902_v12 = vpop.permute.xlu0 %901  ;;  %v3114_v57 = vpop.permute.xlu1 %804 }
 0x1e3   : > { %v815_v21 = vsel %vm645_vm8, %v2844_v25, %v3114_v57 }
 0x1e4   : > { %1170 = vrot.lane.b32.xlu0 %v813_v38, %s2037_s9  ;;  %1174 = vrot.lane.b32.xlu1 %v803_v61, %s2037_s9 }
 0x1e6   : > { %v807_v39 = vpop.permute.xlu0 %806  ;;  %v3120_v51 = vpop.permute.xlu1 %996 }
 0x1e7   : > { %v816_v55 = vsel %vm645_vm8, %v3114_v57, %v807_v39 }
 0x1e8   : > { %1244 = vrot.lane.b32.xlu1 %v908_v6, %s2037_s9  ;;  %1266 = vrot.lane.b32.xlu0 %v3062_v33, %s2037_s9  ;;  %v850_v33 = vsel %vm844_vm13, %v3082_v18, %v839_v11 }
 0x1ea   : > { %v999_v28 = vpop.permute.xlu0 %998  ;;  %v904_v7 = vpop.permute.xlu1 %903 }
 0x1eb   : > { %v909_v26 = vsel %vm564_vm10, %v902_v12, %v904_v7  ;;  %v1007_v10 = vsel %vm1000_vm12, %v3120_v51, %v999_v28 }
 0x1ec   : > { %1172 = vrot.lane.b32.xlu0 %v814_v23, %s2037_s9  ;;  %1290 = vrot.lane.b32.xlu1 %v3074_v24, %s2037_s9 }
 0x1ee   : > { %v3130_v45 = vpop.permute.xlu0 %1032  ;;  %v3132_v50 = vpop.permute.xlu1 %933 }
 0x1f0   : > { %1318 = vrot.lane.b32.xlu0 %v1006_v63, %s2037_s9  ;;  %1316 = vrot.lane.b32.xlu1 %v1005_v32, %s2037_s9 }
 0x1f2   : > { %v3139_v54 = vpop.permute.xlu0 %935  ;;  %v3141_v53 = vpop.permute.xlu1 %969 }
 0x1f3   : > { %v945_v32 = vsel %vm937_vm14, %v3139_v54, %v2878_v48 }
 0x1f4   : > { %1198 = vrot.lane.b32.xlu1 %v839_v11, %s2037_s9  ;;  %1194 = vrot.lane.b32.xlu0 %v849_v60, %s2037_s9  ;;  %v1008_v11 = vsel %vm1000_vm12, %v999_v28, %v2846_v37  ;;  %v944_v28 = vsel %vm937_vm14, %v3132_v50, %v3139_v54 }
 0x1f6   : > { %v3148_v43 = vpop.permute.xlu0 %971  ;;  %v3150_v56 = vpop.permute.xlu1 %840 }
 0x1f8   : > { %1270 = vrot.lane.b32.xlu1 %v943_v20, %s2037_s9  ;;  %1268 = vrot.lane.b32.xlu0 %v942_v30, %s2037_s9  ;;  %v1037_v20 = vsel %vm1036_vm1, %v2930_v46, %v2960_v35  ;;  %v1038_v30 = vsel %vm1036_vm1, %v2960_v35, %v2892_v16 }
 0x1fa   : > { %v3158_v61 = vpop.permute.xlu0 %842  ;;  %v3160_v49 = vpop.permute.xlu1 %876 }
 0x1fc   : > { %1292 = vrot.lane.b32.xlu1 %v978_v29, %s2037_s9  ;;  %1294 = vrot.lane.b32.xlu0 %v979_v15, %s2037_s9  ;;  %v884_v29 = vsel %vm880_vm0, %v3021_v36, %v3019_v1 }
 0x1fe   : > { %v3168_v13 = vpop.permute.xlu0 %878  ;;  %v1155_v58 = vpop.permute.xlu1 %1154 }
 0x1ff   : > { %v1357_v47 = vsel %vm750_vm11, %v2876_v14, %v1155_v58 }
 0x200   : > { %1196 = vrot.lane.b32.xlu0 %v850_v33, %s2037_s9  ;;  %1320 = vrot.lane.b32.xlu1 %v3120_v51, %s2037_s9 }
 0x202   : > { %v1157_v31 = vpop.permute.xlu0 %1156  ;;  %v3175_v9 = vpop.permute.xlu1 %1034 }
 0x203   : > { %v1358_v24 = vsel %vm750_vm11, %v1155_v58, %v1157_v31 }
 0x204   : > { %1248 = vrot.lane.b32.xlu0 %v902_v12, %s2037_s9  ;;  %1252 = vrot.lane.b32.xlu1 %v904_v7, %s2037_s9  ;;  %v881_v7 = vsel %vm880_vm0, %v2866_v0, %v2942_v42 }
 0x205   : > { %1508 = vmatprep.subr.bf16.mxu0 %v1358_v24 }
 0x206   : > { %1509 = vmatpush1.bf16.msra.mxu0 %v1357_v47  ;;  %v1235_v17 = vpop.permute.xlu0 %1234  ;;  %v1231_v18 = vpop.permute.xlu1 %1230  ;;  %v980_v47 = vsel %vm973_vm15, %v3141_v53, %v3148_v43 }
 0x208   : > { %1176 = vrot.lane.b32.xlu0 %v815_v21, %s2037_s9  ;;  %1180 = vrot.lane.b32.xlu1 %v807_v39, %s2037_s9  ;;  %v851_v39 = vsel %vm844_vm13, %v2864_v27, %v3150_v56 }
 0x20a   : > { %v1159_v3 = vpop.permute.xlu0 %1158  ;;  %v3187_v52 = vpop.permute.xlu1 %1302 }
 0x20c   : > { %1250 = vrot.lane.b32.xlu0 %v909_v26, %s2037_s9  ;;  %1272 = vrot.lane.b32.xlu1 %v3132_v50, %s2037_s9  ;;  %v1040_v26 = vsel %vm1036_vm1, %v3029_v2, %v2892_v16 }
 0x20e   : > { %v1255_v14 = vpop.permute.xlu0 %1254  ;;  %v1163_v4 = vpop.permute.xlu1 %1162 }
 0x210   : > { %1178 = vrot.lane.b32.xlu0 %v816_v55, %s2037_s9  ;;  %1296 = vrot.lane.b32.xlu1 %v3141_v53, %s2037_s9 }
 0x212   : > { %v1161_v25 = vpop.permute.xlu0 %1160  ;;  %v1233_v44 = vpop.permute.xlu1 %1232 }
 0x213   : > { %v1359_v19 = vsel %vm750_vm11, %v1159_v3, %v1161_v25  ;;  %v1360_v59 = vsel %vm750_vm11, %v1161_v25, %v1163_v4  ;;  %v1384_v12 = vsel %vm750_vm11, %v1233_v44, %v1235_v17  ;;  %v1383_v57 = vsel %vm750_vm11, %v1231_v18, %v1233_v44 }
 0x214   : > { %1324 = vrot.lane.b32.xlu0 %v1008_v11, %s2037_s9  ;;  %1322 = vrot.lane.b32.xlu1 %v1007_v10, %s2037_s9  ;;  %v883_v17 = vsel %vm880_vm0, %v2866_v0, %v3021_v36  ;;  %v1039_v36 = vsel %vm1036_vm1, %v3031_v5, %v3029_v2  ;;  %v1993_v2 = vld [vmem:[%s3520_s3 + $0xc] ss:$20 sps:$4 sm:$0xff]   ;;  %v852_v11 = vsel %vm844_vm13, %v3150_v56, %v3158_v61 }
 0x215   : > { %1510 = vmatprep.subr.bf16.mxu0 %v1360_v59  ;;  %1555 = vmatprep.subr.bf16.mxu1 %v1384_v12  ;;  %v1041_v59 = vsel %vm1036_vm1, %v3072_v8, %v3102_v62  ;;  %v885_v12 = vsel %vm880_vm0, %v2866_v0, %v3060_v34 }
 0x216   : > { %1511 = vmatpush1.bf16.msra.mxu0 %v1359_v19  ;;  %1556 = vmatpush1.bf16.msra.mxu1 %v1383_v57  ;;  %v1307_v37 = vpop.permute.xlu0 %1306  ;;  %v1279_v38 = vpop.permute.xlu1 %1278 }
 0x217   : > { %1587 = vmatprep.mubr.bf16.mxu1 %v1993_v2 }
 0x218   : > { %1204 = vrot.lane.b32.xlu1 %v3158_v61, %s2037_s9  ;;  %1200 = vrot.lane.b32.xlu0 %v851_v39, %s2037_s9 }
 0x21a   : > { %v1183_v51 = vpop.permute.xlu0 %1182  ;;  %v3214_v6 = vpop.permute.xlu1 %1304 }
 0x21b   : > { %v3224_v23 = vsel %vm750_vm11, %v3214_v6, %v1307_v37  ;;  %v1042_v37 = vsel %vm1036_vm1, %v3102_v62, %v2892_v16 }
 0x21c   : > { %1274 = vrot.lane.b32.xlu1 %v944_v28, %s2037_s9  ;;  %1206 = vrot.lane.b32.xlu0 %v881_v7, %s2037_s9  ;;  %v888_v7 = vsel %vm880_vm0, %v3160_v49, %v3168_v13 }
 0x21e   : > { %v1257_v27 = vpop.permute.xlu0 %1256  ;;  %v1187_v63 = vpop.permute.xlu1 %1186 }
 0x21f   : > { %v3232_v50 = vsel %vm750_vm11, %v1255_v14, %v1257_v27 }
 0x220   : > { %1210 = vrot.lane.b32.xlu1 %v2964_v22, %s2037_s9  ;;  %1276 = vrot.lane.b32.xlu0 %v945_v32, %s2037_s9 }
 0x222   : > { %v1283_v42 = vpop.permute.xlu0 %1282  ;;  %v1259_v60 = vpop.permute.xlu1 %1258 }
 0x223   : > { %v3244_v48 = vsel %vm750_vm11, %v1257_v27, %v1259_v60  ;;  %v1043_v27 = vsel %vm1036_vm1, %v3130_v45, %v3175_v9  ;;  %v1058_v60 = vld [vmem:[%s3521_s4 + $0x8] sm:$0xff] }
 0x224   : > { %1328 = vrot.lane.b32.xlu1 %v1037_v20, %s2037_s9  ;;  %1330 = vrot.lane.b32.xlu0 %v1038_v30, %s2037_s9 }
 0x226   : > { %v1185_v22 = vpop.permute.xlu0 %1184  ;;  %v1281_v54 = vpop.permute.xlu1 %1280 }
 0x227   : > { %v3252_v15 = vsel %vm750_vm11, %v1183_v51, %v1185_v22  ;;  %v3255_v58 = vsel %vm750_vm11, %v1185_v22, %v1187_v63  ;;  %v3258_v35 = vsel %vm750_vm11, %v1281_v54, %v1283_v42  ;;  %v3261_v33 = vsel %vm750_vm11, %v1279_v38, %v1281_v54  ;;  %v1675_v54 = vld [vmem:[%s3523_s6] sm:$0xff] }
 0x228   : > { %1326 = vrot.lane.b32.xlu1 %v2930_v46, %s2037_s9  ;;  %1214 = vrot.lane.b32.xlu0 %v884_v29, %s2037_s9  ;;  %v981_v46 = vsel %vm973_vm15, %v3148_v43, %v2894_v40  ;;  %v886_v43 = vsel %vm880_vm0, %v3060_v34, %v3092_v41  ;;  %v1999_v34 = vld [vmem:[%s3520_s3 + $0x4] ss:$20 sps:$4 sm:$0xff]   ;;  %v887_v51 = vsel %vm880_vm0, %v2866_v0, %v3160_v49  ;;  %v1676_v29 = vld [vmem:[%s3523_s6 + $0x8] sm:$0x1] }
 0x229   : > { %1534 = vmatprep.mubr.bf16.mxu0 %v1999_v34  ;;  %v1044_v49 = vsel %vm1036_vm1, %v3175_v9, %v2892_v16  ;;  %v1059_v16 = vld [vmem:[%s3521_s4 + $0x10] sm:$0xff] }
 0x22a   : > { %v3266_v31 = vpop.permute.xlu0 %1208  ;;  %v1309_v24 = vpop.permute.xlu1 %1308 }
 0x22c   : > { %1298 = vrot.lane.b32.xlu1 %v980_v47, %s2037_s9  ;;  %1212 = vrot.lane.b32.xlu0 %v883_v17, %s2037_s9 }
 0x22e   : > { %v1237_v18 = vpop.permute.xlu0 %1236  ;;  %v1169_v21 = vpop.permute.xlu1 %1168 }
 0x230   : > { %1216 = vrot.lane.b32.xlu1 %v3019_v1, %s2037_s9  ;;  %1300 = vrot.lane.b32.xlu0 %v981_v46, %s2037_s9 }
 0x232   : > { %v1241_v53 = vpop.permute.xlu0 %1240  ;;  %v1239_v3 = vpop.permute.xlu1 %1238 }
 0x233   : > { %v1386_v14 = vsel %vm750_vm11, %v1239_v3, %v1241_v53  ;;  %v1385_v4 = vsel %vm750_vm11, %v1237_v18, %v1239_v3 }
 0x234   : > { %1334 = vrot.lane.b32.xlu1 %v1039_v36, %s2037_s9  ;;  %1336 = vrot.lane.b32.xlu0 %v1040_v26, %s2037_s9 }
 0x235   : > { %1557 = vmatprep.subr.bf16.mxu1 %v1386_v14 }
 0x236   : > { %1558 = vmatpush1.bf16.msra.mxu1 %v1385_v4  ;;  %v1165_v40 = vpop.permute.xlu0 %1164  ;;  %v1261_v1 = vpop.permute.xlu1 %1260 }
 0x238   : > { %1332 = vrot.lane.b32.xlu1 %v3031_v5, %s2037_s9  ;;  %1220 = vrot.lane.b32.xlu0 %v886_v43, %s2037_s9 }
 0x23a   : > { %v1167_v55 = vpop.permute.xlu0 %1166  ;;  %v1285_v25 = vpop.permute.xlu1 %1284 }
 0x23b   : > { %v1361_v44 = vsel %vm750_vm11, %v1165_v40, %v1167_v55  ;;  %v1362_v10 = vsel %vm750_vm11, %v1167_v55, %v1169_v21 }
 0x23c   : > { %1222 = vrot.lane.b32.xlu1 %v3092_v41, %s2037_s9  ;;  %1202 = vrot.lane.b32.xlu0 %v852_v11, %s2037_s9 }
 0x23d   : > { %1512 = vmatprep.subr.bf16.mxu0 %v1362_v10 }
 0x23e   : > { %1513 = vmatpush1.bf16.msra.mxu0 %v1361_v44  ;;  %v1313_v5 = vpop.permute.xlu0 %1312  ;;  %v1311_v19 = vpop.permute.xlu1 %1310 }
 0x23f   : > { %v3316_v56 = vsel %vm750_vm11, %v1311_v19, %v1313_v5  ;;  %v3319_v61 = vsel %vm750_vm11, %v1309_v24, %v1311_v19 }
 0x240   : > { %1340 = vrot.lane.b32.xlu1 %v1041_v59, %s2037_s9  ;;  %1218 = vrot.lane.b32.xlu0 %v885_v12, %s2037_s9 }
 0x242   : > { %v3323_v41 = vpop.permute.xlu0 %1188  ;;  %v3325_v57 = vpop.permute.xlu1 %1192 }
 0x244   : > { %1338 = vrot.lane.b32.xlu1 %v3072_v8, %s2037_s9  ;;  %1342 = vrot.lane.b32.xlu0 %v1042_v37, %s2037_s9 }
 0x246   : > { %v3336_v38 = vpop.permute.xlu0 %1264  ;;  %v3338_v39 = vpop.permute.xlu1 %1262 }
 0x247   : > { %v3345_v62 = vsel %vm750_vm11, %v1261_v1, %v3338_v39 }
 0x248   : > { %1228 = vrot.lane.b32.xlu1 %v3168_v13, %s2037_s9  ;;  %1224 = vrot.lane.b32.xlu0 %v887_v51, %s2037_s9  ;;  %v1057_v13 = vld [vmem:[%s3521_s4] sm:$0xff] }
 0x24a   : > { %v1289_v8 = vpop.permute.xlu0 %1288  ;;  %v1287_v28 = vpop.permute.xlu1 %1286 }
 0x24b   : > { %v3357_v0 = vsel %vm750_vm11, %v1287_v28, %v1289_v8  ;;  %v3360_v63 = vsel %vm750_vm11, %v1285_v25, %v1287_v28 }
 0x24c   : > { %1226 = vrot.lane.b32.xlu0 %v888_v7, %s2037_s9  ;;  %1346 = vrot.lane.b32.xlu1 %v1043_v27, %s2037_s9 }
 0x24e   : > { %v3364_v32 = vpop.permute.xlu0 %1190  ;;  %v1243_v42 = vpop.permute.xlu1 %1242 }
 0x250   : > { %1348 = vrot.lane.b32.xlu0 %v1044_v49, %s2037_s9  ;;  %1344 = vrot.lane.b32.xlu1 %v3130_v45, %s2037_s9  ;;  %v1060_v45 = vld [vmem:[%s3521_s4 + $0x18] sm:$0xff] }
 0x252   : > { %v1247_v20 = vpop.permute.xlu0 %1246  ;;  %v1315_v30 = vpop.permute.xlu1 %1314 }
 0x254   : > { %1063 = vperm.xlu0 %1941, %v1057_v13   ;;  %1068 = vperm.xlu1 %1942, %v1058_v60  }
 0x256   : > { %v1171_v9 = vpop.permute.xlu0 %1170  ;;  %v1175_v22 = vpop.permute.xlu1 %1174 }
 0x258   : > { %1073 = vperm.xlu0 %1941, %v1059_v16   ;;  %1078 = vperm.xlu1 %1942, %v1060_v45  }
 0x25a   : > { %v1267_v24 = vpop.permute.xlu0 %1266  ;;  %v1245_v47 = vpop.permute.xlu1 %1244 }
 0x25b   : > { %v1388_v17 = vsel %vm750_vm11, %v1245_v47, %v1247_v20  ;;  %v1387_v18 = vsel %vm750_vm11, %v1243_v42, %v1245_v47  ;;  %v1394_v42 = vsel %vm750_vm11, %v3338_v39, %v3336_v38 }
 0x25c   : > { %1679 = vperm.xlu0 %1941, %v1675_v54   ;;  %1684 = vperm.xlu1 %1942, %v1676_v29  }
 0x25d   : > { %1559 = vmatprep.subr.bf16.mxu1 %v1388_v17 }
 0x25e   : > { %1560 = vmatpush1.bf16.msra.mxu1 %v1387_v18  ;;  %v1173_v21 = vpop.permute.xlu0 %1172  ;;  %v3392_v46 = vpop.permute.xlu1 %1290 }
 0x25f   : > { %v1363_v53 = vsel %vm750_vm11, %v1171_v9, %v1173_v21  ;;  %v1364_v3 = vsel %vm750_vm11, %v1173_v21, %v1175_v22 }
 0x260   : > { %1514 = vmatprep.subr.bf16.mxu0 %v1364_v3 }
 0x261   : > { %1515 = vmatpush1.bf16.msra.mxu0 %v1363_v53  ;;  %v1407_v53 = vsel %vm750_vm11, %v3187_v52, %v3214_v6 }
 0x262   : > { %v1319_v36 = vpop.permute.xlu0 %1318  ;;  %v1317_v26 = vpop.permute.xlu1 %1316 }
 0x263   : > { %v3397_v14 = vsel %vm750_vm11, %v1317_v26, %v1319_v36  ;;  %v3400_v4 = vsel %vm750_vm11, %v1315_v30, %v1317_v26 }
 0x266   : > { %v1195_v40 = vpop.permute.xlu0 %1194  ;;  %v1199_v1 = vpop.permute.xlu1 %1198 }
 0x26a   : > { %v1269_v43 = vpop.permute.xlu0 %1268  ;;  %v1271_v2 = vpop.permute.xlu1 %1270 }
 0x26b   : > { %v1395_v39 = vsel %vm750_vm11, %v1267_v24, %v1269_v43 }
 0x26e   : > { %v1295_v55 = vpop.permute.xlu0 %1294  ;;  %v3402_v25 = vpop.permute.xlu1 %1292 }
 0x26f   : > { %v1404_v29 = vsel %vm750_vm11, %v3402_v25, %v1295_v55  ;;  %v1403_v17 = vsel %vm750_vm11, %v3392_v46, %v3402_v25 }
 0x272   : > { %v1197_v44 = vpop.permute.xlu0 %1196  ;;  %v3404_v11 = vpop.permute.xlu1 %1320 }
 0x276   : > { %v1249_v10 = vpop.permute.xlu0 %1248  ;;  %v1253_v5 = vpop.permute.xlu1 %1252 }
 0x27a   : > { %v1177_v19 = vpop.permute.xlu0 %1176  ;;  %v1181_v59 = vpop.permute.xlu1 %1180 }
 0x27e   : > { %v1251_v12 = vpop.permute.xlu0 %1250  ;;  %v1273_v37 = vpop.permute.xlu1 %1272 }
 0x27f   : > { %v1390_v34 = vsel %vm750_vm11, %v1251_v12, %v1253_v5  ;;  %v1389_v51 = vsel %vm750_vm11, %v1249_v10, %v1251_v12 }
 0x280   : > { %1561 = vmatprep.subr.bf16.mxu1 %v1390_v34  ;;  %v1996_v34 = vld [vmem:[%s3520_s3 + $0x30] ss:$20 sps:$4 sm:$0xff]  }
 0x281   : > { %1562 = vmatpush1.bf16.msra.mxu1 %v1389_v51 }
 0x282   : > { %v1179_v8 = vpop.permute.xlu0 %1178  ;;  %1563 = vmatprep.subr.bf16.mxu1 %v3244_v48  ;;  %v1297_v28 = vpop.permute.xlu1 %1296  ;;  %v1370_v48 = vsel %vm750_vm11, %v3364_v32, %v3325_v57  ;;  %v1371_v57 = vsel %vm750_vm11, %v1195_v40, %v1197_v44 }
 0x283   : > { %v1365_v7 = vsel %vm750_vm11, %v1177_v19, %v1179_v8  ;;  %v1366_v27 = vsel %vm750_vm11, %v1179_v8, %v1181_v59 }
 0x284   : > { %1516 = vmatprep.subr.bf16.mxu0 %v1366_v27 }
 0x285   : > { %1517 = vmatpush1.bf16.msra.mxu0 %v1365_v7  ;;  %1564 = vmatpush1.bf16.msra.mxu1 %v3232_v50  ;;  %v1396_v50 = vsel %vm750_vm11, %v1269_v43, %v1271_v2 }
 0x286   : > { %v3415_v49 = vpop.permute.xlu0 %1324  ;;  %1518 = vmatprep.subr.bf16.mxu0 %v3255_v58  ;;  %1565 = vmatprep.subr.bf16.mxu1 %v1394_v42  ;;  %v3418_v13 = vpop.permute.xlu1 %1322  ;;  %v1369_v58 = vsel %vm750_vm11, %v3323_v41, %v3364_v32 }
 0x287   : > { %v1414_v6 = vsel %vm750_vm11, %v3418_v13, %v3415_v49  ;;  %v1997_v49 = vld [vmem:[%s3520_s3] ss:$20 sps:$4 sm:$0xff]  }
 0x289   : > { %1519 = vmatpush1.bf16.msra.mxu0 %v3252_v15  ;;  %1566 = vmatpush1.bf16.msra.mxu1 %v3345_v62  ;;  %v1372_v15 = vsel %vm750_vm11, %v1197_v44, %v1199_v1  ;;  %v1413_v1 = vsel %vm750_vm11, %v3404_v11, %v3418_v13  ;;  %v2001_v13 = vld [vmem:[%s3520_s3 + $0x2c] ss:$20 sps:$4 sm:$0xff]  }
 0x28a   : > { %v1201_v60 = vpop.permute.xlu0 %1200  ;;  %1520 = vmatprep.subr.bf16.mxu0 %v1370_v48  ;;  %1567 = vmatprep.subr.bf16.mxu1 %v1396_v50  ;;  %v1205_v38 = vpop.permute.xlu1 %1204 }
 0x28d   : > { %1521 = vmatpush1.bf16.msra.mxu0 %v1369_v58  ;;  %1568 = vmatpush1.bf16.msra.mxu1 %v1395_v39  ;;  %v2000_v39 = vld [vmem:[%s3520_s3 + $0x10] ss:$20 sps:$4 sm:$0xff]  }
 0x28e   : > { %v1207_v62 = vpop.permute.xlu0 %1206  ;;  %1522 = vmatprep.subr.bf16.mxu0 %v1372_v15  ;;  %v1275_v20 = vpop.permute.xlu1 %1274  ;;  %v2003_v15 = vld [vmem:[%s3520_s3 + $0x28] ss:$20 sps:$4 sm:$0xff]  }
 0x28f   : > { %v1397_v9 = vsel %vm750_vm11, %v1273_v37, %v1275_v20 }
 0x291   : > { %1523 = vmatpush1.bf16.msra.mxu0 %v1371_v57 }
 0x292   : > { %v1277_v30 = vpop.permute.xlu0 %1276  ;;  %v1211_v16 = vpop.permute.xlu1 %1210 }
 0x293   : > { %v1398_v45 = vsel %vm750_vm11, %v1275_v20, %v1277_v30  ;;  %v1376_v52 = vsel %vm750_vm11, %v3266_v31, %v1211_v16 }
 0x294   : > { %1569 = vmatprep.subr.bf16.mxu1 %v1398_v45 }
 0x295   : > { %1570 = vmatpush1.bf16.msra.mxu1 %v1397_v9 }
 0x296   : > { %v1331_v41 = vpop.permute.xlu0 %1330  ;;  %1571 = vmatprep.subr.bf16.mxu1 %v3258_v35  ;;  %v1329_v32 = vpop.permute.xlu1 %1328 }
 0x297   : > { %v1416_v2 = vsel %vm750_vm11, %v1329_v32, %v1331_v41 }
 0x299   : > { %1572 = vmatpush1.bf16.msra.mxu1 %v3261_v33 }
 0x29a   : > { %v1215_v22 = vpop.permute.xlu0 %1214  ;;  %1573 = vmatprep.subr.bf16.mxu1 %v3357_v0  ;;  %v1327_v54 = vpop.permute.xlu1 %1326 }
 0x29b   : > { %v1415_v44 = vsel %vm750_vm11, %v1327_v54, %v1329_v32 }
 0x29d   : > { %1574 = vmatpush1.bf16.msra.mxu1 %v3360_v63 }
 0x29e   : > { %v1213_v24 = vpop.permute.xlu0 %1212  ;;  %1575 = vmatprep.subr.bf16.mxu1 %v1404_v29  ;;  %v1299_v47 = vpop.permute.xlu1 %1298 }
 0x29f   : > { %v1405_v0 = vsel %vm750_vm11, %v1297_v28, %v1299_v47  ;;  %v1377_v11 = vsel %vm750_vm11, %v1213_v24, %v1215_v22 }
 0x2a1   : > { %1576 = vmatpush1.bf16.msra.mxu1 %v1403_v17 }
 0x2a2   : > { %v1301_v35 = vpop.permute.xlu0 %1300  ;;  %v1217_v18 = vpop.permute.xlu1 %1216 }
 0x2a3   : > { %v1406_v33 = vsel %vm750_vm11, %v1299_v47, %v1301_v35  ;;  %v1378_v43 = vsel %vm750_vm11, %v1215_v22, %v1217_v18 }
 0x2a4   : > { %1577 = vmatprep.subr.bf16.mxu1 %v1406_v33 }
 0x2a5   : > { %1578 = vmatpush1.bf16.msra.mxu1 %v1405_v0 }
 0x2a6   : > { %v1337_v63 = vpop.permute.xlu0 %1336  ;;  %1579 = vmatprep.subr.bf16.mxu1 %v3224_v23  ;;  %v1335_v21 = vpop.permute.xlu1 %1334 }
 0x2a7   : > { %v1418_v5 = vsel %vm750_vm11, %v1335_v21, %v1337_v63 }
 0x2a9   : > { %1580 = vmatpush1.bf16.msra.mxu1 %v1407_v53 }
 0x2aa   : > { %v1221_v3 = vpop.permute.xlu0 %1220  ;;  %1581 = vmatprep.subr.bf16.mxu1 %v3316_v56  ;;  %v1333_v46 = vpop.permute.xlu1 %1332 }
 0x2ab   : > { %v1417_v12 = vsel %vm750_vm11, %v1333_v46, %v1335_v21 }
 0x2ad   : > { %1582 = vmatpush1.bf16.msra.mxu1 %v3319_v61 }
 0x2ae   : > { %v1203_v36 = vpop.permute.xlu0 %1202  ;;  %1583 = vmatprep.subr.bf16.mxu1 %v3397_v14  ;;  %v1223_v26 = vpop.permute.xlu1 %1222  ;;  %v1375_v14 = vsel %vm750_vm11, %v1207_v62, %v3266_v31  ;;  %v1994_v31 = vld [vmem:[%s3520_s3 + $0x34] ss:$20 sps:$4 sm:$0xff]   ;;  %v2004_v62 = vld [vmem:[%s3520_s3 + $0x38] ss:$20 sps:$4 sm:$0xff]  }
 0x2af   : > { %v1373_v40 = vsel %vm750_vm11, %v1201_v60, %v1203_v36  ;;  %v1374_v23 = vsel %vm750_vm11, %v1203_v36, %v1205_v38  ;;  %v1380_v10 = vsel %vm750_vm11, %v1221_v3, %v1223_v26  ;;  %v3636_v60 = vmov 0  }
 0x2b0   : > { %1524 = vmatprep.subr.bf16.mxu0 %v1374_v23 }
 0x2b1   : > { %1525 = vmatpush1.bf16.msra.mxu0 %v1373_v40  ;;  %1584 = vmatpush1.bf16.msra.mxu1 %v3400_v4  ;;  %v1991_v4 = vld [vmem:[%s3520_s3 + $0x8] ss:$20 sps:$4 sm:$0xff]  }
 0x2b2   : > { %v1219_v56 = vpop.permute.xlu0 %1218  ;;  %1526 = vmatprep.subr.bf16.mxu0 %v1376_v52  ;;  %1585 = vmatprep.subr.bf16.mxu1 %v1414_v6  ;;  %v1341_v61 = vpop.permute.xlu1 %1340 }
 0x2b3   : > { %v1379_v37 = vsel %vm750_vm11, %v1219_v56, %v1221_v3 }
 0x2b5   : > { %1527 = vmatpush1.bf16.msra.mxu0 %v1375_v14  ;;  %1586 = vmatpush1.bf16.msra.mxu1 %v1413_v1 }
 0x2b6   : > { %v1343_v55 = vpop.permute.xlu0 %1342  ;;  %1528 = vmatprep.subr.bf16.mxu0 %v1378_v43  ;;  %1608 = vmatprep.subr.bf16.mxu1 %v1416_v2  ;;  %v1339_v25 = vpop.permute.xlu1 %1338 }
 0x2b7   : > { %v1420_v51 = vsel %vm750_vm11, %v1341_v61, %v1343_v55  ;;  %v1419_v42 = vsel %vm750_vm11, %v1339_v25, %v1341_v61 }
 0x2b8   : > { %1588 = vmatmul.mubr.bf16.vlgmr.msra.gmra.mrb[0].mxu1 %v1991_v4 }
 0x2b9   : > { %1529 = vmatpush1.bf16.msra.mxu0 %v1377_v11  ;;  %1609 = vmatpush1.bf16.msra.mxu1 %v1415_v44 }
 0x2ba   : > { %v1225_v19 = vpop.permute.xlu0 %1224  ;;  %1530 = vmatprep.subr.bf16.mxu0 %v1380_v10  ;;  %1610 = vmatprep.subr.bf16.mxu1 %v1418_v5  ;;  %v1229_v59 = vpop.permute.xlu1 %1228 }
 0x2bb   : > { %1597 = vmatprep.mubr.bf16.mxu1 %v1994_v31 }
 0x2bd   : > { %1531 = vmatpush1.bf16.msra.mxu0 %v1379_v37  ;;  %1611 = vmatpush1.bf16.msra.mxu1 %v1417_v12 }
 0x2be   : > { %v1227_v8 = vpop.permute.xlu0 %1226  ;;  %1612 = vmatprep.subr.bf16.mxu1 %v1420_v51  ;;  %v1347_v28 = vpop.permute.xlu1 %1346  ;;  %v2005_v51 = vld [vmem:[%s3522_s5] sm:$0x1f]  }
 0x2bf   : > { %v1381_v7 = vsel %vm750_vm11, %v1225_v19, %v1227_v8  ;;  %v1382_v27 = vsel %vm750_vm11, %v1227_v8, %v1229_v59 }
 0x2c0   : > { %1532 = vmatprep.subr.bf16.mxu0 %v1382_v27  ;;  %1598 = vmatmul.mubr.bf16.gmra.mrb[4].mxu1 %v1996_v34 }
 0x2c1   : > { %1533 = vmatpush1.bf16.msra.mxu0 %v1381_v7  ;;  %1613 = vmatpush1.bf16.msra.mxu1 %v1419_v42 }
 0x2c2   : > { %v1349_v48 = vpop.permute.xlu0 %1348  ;;  %v1345_v50 = vpop.permute.xlu1 %1344  ;;  %1640 = vmatprep.mubr.bf16.mxu1 %v3636_v60 }
 0x2c3   : > { %v1421_v38 = vsel %vm750_vm11, %v1345_v50, %v1347_v28  ;;  %v1422_v58 = vsel %vm750_vm11, %v1347_v28, %v1349_v48 }
 0x2c4   : > { %1535 = vmatmul.mubr.bf16.vlgmr.msra.gmra.mrb[16].mxu0 %v1997_v49  ;;  %1614 = vmatprep.subr.bf16.mxu1 %v1422_v58 }
 0x2c5   : > { %1615 = vmatpush1.bf16.msra.mxu1 %v1421_v38  ;;  %1544 = vmatprep.mubr.bf16.mxu0 %v2001_v13 }
 0x2c8   : > { %1880 = vmatmul.mubr.msk.bf16.vlgmr.msra.gmra.mrb[0].mxu1 %vm1495_vm2, %v2000_v39 }
 0x2c9   : > { %1650 = vmatprep.mubr.bf16.mxu1 %v3636_v60 }
 0x2cc   : > { %1545 = vmatmul.mubr.bf16.gmra.mrb[20].mxu0 %v2003_v15 }
 0x2d0   : > { %1881 = vmatmul.mubr.msk.bf16.gmra.mrb[4].mxu1 %vm1495_vm2, %v2004_v62 }
 0x2d1   : > { %1728 = vmatprep.mubr.bf16.mxu1 %v3636_v60 }
 0x2d3   : > { %v1064_v30 = vpop.permute.xlu0 %1063  ;;  %v1069_v41 = vpop.permute.xlu1 %1068 }
 0x2d7   : > { %v1074_v46 = vpop.permute.xlu0 %1073  ;;  %v1079_v56 = vpop.permute.xlu1 %1078 }
 0x2db   : > { %v1680_v8 = vpop.permute.xlu0 %1679  ;;  %v1685_v42 = vpop.permute.xlu1 %1684 }
 0x397   : > { %v1536_v20 = vpop.f32.mrb[16].mxu0 }
 0x398   : > { %v1538_v57 = vpop.f32.mrb[17].mxu0  ;;  %v1537_v45 = vadd.f32 %v1536_v20, %v1064_v30 }
 0x399   : > { %v1540_v16 = vpop.f32.mrb[18].mxu0  ;;  %v1539_v32 = vadd.f32 %v1538_v57, %v1064_v30 }
 0x39a   : > { %v1542_v9 = vpop.f32.mrb[19].mxu0  ;;  %v1541_v54 = vadd.f32 %v1540_v16, %v1069_v41 }
 0x39b   : > { %v1642_v22 = vpop.f32.mrb[0].mxu1  ;;  %v1543_v47 = vadd.f32 %v1542_v9, %v1069_v41  ;;  %v3637_v41 = vlaneseq }
 0x39c   : > { %v1892_v29 = vadd.f32 %v1642_v22, %v1537_v45  ;;  %v1644_v24 = vpop.f32.mrb[1].mxu1 }
 0x39d   : > { %v1894_v17 = vadd.f32 %v1644_v24, %v1539_v32  ;;  %v1646_v35 = vpop.f32.mrb[2].mxu1  ;;  %v1764_v32 = vshrl.u32 %v3637_v41, 7 }
 0x39e   : > { %v1896_v18 = vadd.f32 %v1646_v35, %v1541_v54  ;;  %v1648_v33 = vpop.f32.mrb[3].mxu1  ;;  %v1661_v21 = vmax.f32 %v1892_v29, 0.0  ;;  %v2045_v54 = vmov 1600.0  }
 0x39f   : > { %v1898_v0 = vadd.f32 %v1648_v33, %v1543_v47  ;;  %v1546_v63 = vpop.f32.mrb[20].mxu0  ;;  %v1662_v36 = vmax.f32 %v1894_v17, 0.0  ;;  %vm1766_vm4 = vcmp.eq.s32.totalorder %v1764_v32, 0  ;;  %v2046_v47 = vmov -800.0  }
 0x3a0   : > { %v1663_v53 = vmax.f32 %v1896_v18, 0.0  ;;  %v1548_v3 = vpop.f32.mrb[21].mxu0  ;;  %v1547_v52 = vadd.f32 %v1546_v63, %v1074_v46  ;;  %v1768_v29 = vsel %vm1766_vm4, 1.0, %v2045_v54  ;;  %v1770_v17 = vsel %vm1766_vm4, 0.0, %v2046_v47 }
 0x3a1   : > { %v1664_v26 = vmax.f32 %v1898_v0, 0.0  ;;  %v1550_v40 = vpop.f32.mrb[22].mxu0  ;;  %v1549_v14 = vadd.f32 %v1548_v3, %v1074_v46 }
 0x3a2   : > { %v1669_v23 = vpack.c.bf16 %v1663_v53, %v1661_v21  ;;  %v1552_v6 = vpop.f32.mrb[23].mxu0  ;;  %v1551_v4 = vadd.f32 %v1550_v40, %v1079_v56 }
 0x3a3   : > { %v1670_v61 = vpack.c.bf16 %v1664_v26, %v1662_v36  ;;  %v1652_v1 = vpop.f32.mrb[4].mxu1  ;;  %v1553_v55 = vadd.f32 %v1552_v6, %v1079_v56 }
 0x3a4   : > { %v1900_v43 = vadd.f32 %v1652_v1, %v1547_v52  ;;  %v1654_v2 = vpop.f32.mrb[5].mxu1 }
 0x3a5   : > { %v1902_v25 = vadd.f32 %v1654_v2, %v1549_v14  ;;  %v1656_v31 = vpop.f32.mrb[6].mxu1  ;;  %1696 = vmatprep.subr.bf16.mxu1 %v1670_v61 }
 0x3a6   : > { %v1904_v44 = vadd.f32 %v1656_v31, %v1551_v4  ;;  %v1658_v11 = vpop.f32.mrb[7].mxu1  ;;  %1697 = vmatpush1.bf16.msra.mxu1 %v1669_v23  ;;  %v1665_v5 = vmax.f32 %v1900_v43, 0.0 }
 0x3a7   : > { %v1906_v10 = vadd.f32 %v1658_v11, %v1553_v55  ;;  %v1666_v59 = vmax.f32 %v1902_v25, 0.0 }
 0x3a8   : > { %v1667_v19 = vmax.f32 %v1904_v44, 0.0 }
 0x3a9   : > { %v1668_v12 = vmax.f32 %v1906_v10, 0.0 }
 0x3aa   : > { %v1671_v37 = vpack.c.bf16 %v1667_v19, %v1665_v5 }
 0x3ab   : > { %v1672_v34 = vpack.c.bf16 %v1668_v12, %v1666_v59 }
 0x3ad   : > { %1698 = vmatprep.subr.bf16.mxu1 %v1672_v34 }
 0x3ae   : > { %1699 = vmatpush1.bf16.msra.mxu1 %v1671_v37 }
 0x3b1   : > { %1883 = vmatmul.mubr.msk.bf16.vlgmr.msra.gmra.mrb[8].mxu1 %vm1692_vm3, %v2005_v51 }
 0x484   : > { %v1730_v28 = vpop.f32.mrb[8].mxu1 }
 0x485   : > { %v1731_v7 = vadd.f32 %v1730_v28, %v1680_v8  ;;  %v1732_v27 = vpop.f32.mrb[9].mxu1 }
 0x486   : > { %v1733_v49 = vadd.f32 %v1732_v27, %v1680_v8  ;;  %v1734_v13 = vpop.f32.mrb[10].mxu1 }
 0x487   : > { %v1884_v48 = vmul.f32 -1.442695, %v1731_v7  ;;  %v1735_v50 = vadd.f32 %v1734_v13, %v1685_v42  ;;  %v1736_v60 = vpop.f32.mrb[11].mxu1 }
 0x488   : > { %v1885_v38 = vmul.f32 -1.442695, %v1733_v49  ;;  %v1737_v58 = vadd.f32 %v1736_v60, %v1685_v42 }
 0x489   : > { %2006 = vpow2.f32 %v1884_v48  ;;  %v1886_v39 = vmul.f32 -1.442695, %v1735_v50 }
 0x48a   : > { %2008 = vpow2.f32 %v1885_v38  ;;  %v1887_v15 = vmul.f32 -1.442695, %v1737_v58 }
 0x48b   : > { %2010 = vpow2.f32 %v1886_v39 }
 0x48c   : > { %2012 = vpow2.f32 %v1887_v15 }
 0x493   : > { %v2007_v62 = vpop.eup %2006 }
 0x494   : > { %v2009_v20 = vpop.eup %2008  ;;  %v1751_v57 = vadd.f32 1.0, %v2007_v62 }
 0x495   : > { %v2011_v30 = vpop.eup %2010  ;;  %v1752_v16 = vadd.f32 1.0, %v2009_v20 }
 0x496   : > { %v2013_v45 = vpop.eup %2012  ;;  %2014 = vrcp.f32 %v1751_v57  ;;  %v1753_v9 = vadd.f32 1.0, %v2011_v30 }
 0x497   : > { %2016 = vrcp.f32 %v1752_v16  ;;  %v1754_v22 = vadd.f32 1.0, %v2013_v45 }
 0x498   : > { %2018 = vrcp.f32 %v1753_v9 }
 0x499   : > { %2020 = vrcp.f32 %v1754_v22 }
 0x4a0   : > { %v2015_v24 = vpop.eup %2014 }
 0x4a1   : > { %v2017_v35 = vpop.eup %2016  ;;  %v1772_v18 = vmul.f32 %v2015_v24, %v1768_v29 }
 0x4a2   : > { %v2019_v33 = vpop.eup %2018  ;;  %v1773_v0 = vmul.f32 %v2017_v35, %v1768_v29 }
 0x4a3   : > { %v2021_v63 = vpop.eup %2020  ;;  %v1776_v21 = vadd.f32 %v1772_v18, %v1770_v17  ;;  %v1774_v53 = vmul.f32 1600.0, %v2019_v33 }
 0x4a4   : > { %v1777_v3 = vadd.f32 %v1773_v0, %v1770_v17  ;;  %v1775_v46 = vmul.f32 1600.0, %v2021_v63 }
 0x4a5   : > { %v1778_v36 = vadd.f32 -800.0, %v1774_v53  ;;  %1780 = vst [vmem:[%s278_s17] sm:$0xff] %v1776_v21 }
 0x4a6   : > { %1781 = vst [vmem:[%s278_s17 + $0x8] sm:$0xff] %v1777_v3  ;;  %v1779_v26 = vadd.f32 -800.0, %v1775_v46 }
 0x4a7   : > { %1782 = vst [vmem:[%s278_s17 + $0x10] sm:$0x1] %v1778_v36 }
 0x4a8   : > { %1783 = vst [vmem:[%s278_s17 + $0x18] sm:$0x1] %v1779_v26 }
 0x4a9 PF: > { %s17_s24 = sadd.s32 1, %s2028_s24  }
 0x4aa   : > { %p14_p4 = scmp.ge.s32.totalorder %s17_s24, 4  }
 0x4ac   :  { %16 = sbr.rel (!%p14_p4) target bundleno = 1 (0x1), region = 78 }

</bundles_post_ra>
